<compile_context>
chip_gen: v6e
topology: v6e:2x2x1
jax: 0.10.0
libtpu: 0.0.40
codegen_flags: <defaults>
</compile_context>

<pallas_src>
import functools

import jax
import jax.numpy as jnp
from jax.experimental import pallas as pl
from jax.experimental.pallas import tpu as pltpu

H = 32                # image height
W = 32                # image width
W_SHIFT = 5           # log2(W)
FLAT_SUB = 8          # flattened pixel tile: sublanes
FLAT_LANE = 128       # flattened pixel tile: lanes (H*W == FLAT_SUB*FLAT_LANE)
NFACE_PARAMS = 16     # A0,B0,C0,A1,B1,C1,|area|,Gx,Gy,Gz,ccode + pad
NUM_OUT_CH = 5        # R, G, B, A, depth
BACKGROUND_Z = -1.0
Z_SENTINEL = 1e30     # "no face yet" depth; real depths are clamped far below this
Z_CLAMP = 1e18        # vertex-depth clamp that keeps interpolated z < Z_SENTINEL
MAX_BT = 8            # max images interleaved per grid step

assert (1 << W_SHIFT) == W and H * W == FLAT_SUB * FLAT_LANE


def _render_kernel(face_ref, out_ref, *, n_faces, bt_per_step):
    """One grid step rasterizes + shades `bt_per_step` full images.

    face_ref : SMEM (B_pad, F*16)             per-face plane coeffs + packed color
    out_ref  : VMEM (bt_per_step, 5, 8, 128)  RGBA + depth, flattened image/channel
    """
    g = pl.program_id(0)

    # Pixel-center NDC coordinates, generated in-register (no input DMA pipelines).
    sub = jax.lax.broadcasted_iota(jnp.int32, (FLAT_SUB, FLAT_LANE), 0)
    lane = jax.lax.broadcasted_iota(jnp.int32, (FLAT_SUB, FLAT_LANE), 1)
    lin = sub * FLAT_LANE + lane                          # flattened pixel index
    col = jnp.bitwise_and(lin, W - 1).astype(jnp.float32)
    row = jnp.right_shift(lin, W_SHIFT).astype(jnp.float32)
    px = (col + 0.5) * (2.0 / W) - 1.0
    py = 1.0 - (row + 0.5) * (2.0 / H)

    sentinel = jnp.float32(Z_SENTINEL)
    best_z = [jnp.full((FLAT_SUB, FLAT_LANE), sentinel, jnp.float32)
              for _ in range(bt_per_step)]
    best_c = [jnp.zeros((FLAT_SUB, FLAT_LANE), jnp.float32)
              for _ in range(bt_per_step)]
    batch_idx = [g * bt_per_step + bt for bt in range(bt_per_step)]

    # Static unroll over faces x interleaved images: each image's z/color select
    # chain is serial in f, but the bt_per_step chains are independent, so the
    # scheduler can fill all VALU slots / hide vsel latency.
    # TODO(synk): switch to lax.fori_loop(..., unroll=4..8) with dynamic SMEM
    # indexing if F grows beyond a few dozen (and to an MXU plane-evaluation
    # matmul for F >~ 64).
    for f in range(n_faces):
        base = f * NFACE_PARAMS
        for bt in range(bt_per_step):
            b = batch_idx[bt]
            a0 = face_ref[b, base + 0]
            b0 = face_ref[b, base + 1]
            c0 = face_ref[b, base + 2]
            a1 = face_ref[b, base + 3]
            b1 = face_ref[b, base + 4]
            c1 = face_ref[b, base + 5]
            aa = face_ref[b, base + 6]    # |area| (e0 + e1 + e2 == |area|)
            gx = face_ref[b, base + 7]
            gy = face_ref[b, base + 8]
            gz = face_ref[b, base + 9]
            cc = face_ref[b, base + 10]   # packed 24-bit rgb code (exact f32 int)

            # Sign-folded edge planes: inside iff all three >= 0.
            e0 = a0 * px + b0 * py + c0
            e1 = a1 * px + b1 * py + c1
            e2 = aa - e0 - e1
            inside = (e0 >= 0.0) & (e1 >= 0.0) & (e2 >= 0.0)

            # Precomputed depth plane (barycentric-interpolated z).
            zpix = gx * px + gy * py + gz

            closer = inside & (zpix < best_z[bt])     # hard z-test (min over faces)
            best_z[bt] = jnp.where(closer, zpix, best_z[bt])
            best_c[bt] = jnp.where(closer, cc, best_c[bt])

    inv255 = jnp.float32(1.0 / 255.0)
    for bt in range(bt_per_step):
        covered = best_z[bt] < sentinel               # derived coverage (no OR chain)
        code = best_c[bt]                             # exact integer in [0, 2^24)
        r8 = jnp.floor(code * (1.0 / 65536.0))
        rem = code - r8 * 65536.0
        g8 = jnp.floor(rem * (1.0 / 256.0))
        b8 = rem - g8 * 256.0
        out_ref[bt, 0, :, :] = r8 * inv255
        out_ref[bt, 1, :, :] = g8 * inv255
        out_ref[bt, 2, :, :] = b8 * inv255
        out_ref[bt, 3, :, :] = covered.astype(jnp.float32)
        out_ref[bt, 4, :, :] = jnp.where(covered, best_z[bt],
                                         jnp.float32(BACKGROUND_Z))


def _pick_bt(batch):
    """Images interleaved per grid step: cap at MAX_BT, keep >= 2 grid steps."""
    if batch <= 1:
        return 1
    return min(MAX_BT, max(1, (batch + 1) // 2))


def mesh_renderer_with_depth(verts, faces, face_albedo, light_dir, ambient=0.3):
    """Forward of MeshRendererWithDepth: returns (images, zbuf).

    verts       : (B, V, 3) float32 vertices (orthographic: x_ndc=x, y_ndc=y, depth=z)
    faces       : (F, 3)   int32 vertex indices
    face_albedo : (F, 3)   float32 per-face albedo
    light_dir   : (3,)     float32 directional light
    Returns images (B, H, W, 4) RGBA and zbuf (B, H, W, 1).
    """
    B = verts.shape[0]
    F = faces.shape[0]

    # ---- glue (plain JAX): gather, flat Lambert shading, plane coefficients ----
    fv = verts[:, faces, :]                                   # (B, F, 3, 3)
    v0, v1, v2 = fv[:, :, 0, :], fv[:, :, 1, :], fv[:, :, 2, :]

    n = jnp.cross(v1 - v0, v2 - v0)
    n = n / (jnp.linalg.norm(n, axis=-1, keepdims=True) + 1e-8)
    lambert = jnp.clip(jnp.einsum("bfc,c->bf", n, light_dir), 0.0, 1.0)
    shaded = face_albedo[None, :, :] * (ambient + (1.0 - ambient) * lambert[..., None])

    # Pack shaded rgb into one exact-in-f32 24-bit integer code (8 bits/channel)
    # so the kernel carries a single color vreg per image and selects once/face.
    q = jnp.round(jnp.clip(shaded, 0.0, 1.0) * 255.0)         # (B, F, 3)
    ccode = q[..., 0] * 65536.0 + q[..., 1] * 256.0 + q[..., 2]

    x0, y0 = v0[..., 0], v0[..., 1]
    x1, y1 = v1[..., 0], v1[..., 1]
    x2, y2 = v2[..., 0], v2[..., 1]
    # Clamp depths so interpolated z stays strictly below Z_SENTINEL (coverage is
    # derived from best_z < Z_SENTINEL in the kernel).
    z0 = jnp.clip(v0[..., 2], -Z_CLAMP, Z_CLAMP)
    z1 = jnp.clip(v1[..., 2], -Z_CLAMP, Z_CLAMP)
    z2 = jnp.clip(v2[..., 2], -Z_CLAMP, Z_CLAMP)

    # Edge-function planes e_i(p) = A_i*px + B_i*py + C_i  (e0+e1+e2 = area).
    A0, B0, C0 = y0 - y1, x1 - x0, x0 * y1 - x1 * y0
    A1, B1, C1 = y1 - y2, x2 - x1, x1 * y2 - x2 * y1
    A2, B2, C2 = y2 - y0, x0 - x2, x2 * y0 - x0 * y2
    area = C0 + C1 + C2
    valid = jnp.abs(area) > 1e-8
    s = jnp.sign(area)
    abs_area = jnp.abs(area)
    safe_area = jnp.where(valid, abs_area, 1.0)

    # Fold sign(area) so inside == (e0' >= 0) & (e1' >= 0) & (e2' >= 0),
    # with e2' = |area| - e0' - e1'.
    A0s, B0s, C0s = s * A0, s * B0, s * C0
    A1s, B1s, C1s = s * A1, s * B1, s * C1
    A2s, B2s, C2s = s * A2, s * B2, s * C2

    # Depth plane zpix(p) = Gx*px + Gy*py + Gz (== (e1'*z0 + e2'*z1 + e0'*z2)/|area|).
    Gx = jnp.where(valid, (A1s * z0 + A2s * z1 + A0s * z2) / safe_area, 0.0)
    Gy = jnp.where(valid, (B1s * z0 + B2s * z1 + B0s * z2) / safe_area, 0.0)
    Gz = jnp.where(valid, (C1s * z0 + C2s * z1 + C0s * z2) / safe_area, 0.0)

    # Degenerate faces: force never-inside (e0' << 0 everywhere).
    C0s = jnp.where(valid, C0s, jnp.float32(-1e18))

    packed = jnp.stack(
        [A0s, B0s, C0s, A1s, B1s, C1s, abs_area, Gx, Gy, Gz, ccode],
        axis=-1).astype(jnp.float32)                          # (B, F, 11)
    packed = jnp.pad(packed, ((0, 0), (0, 0), (0, NFACE_PARAMS - packed.shape[-1])))

    # ---- grid layout: Bt images per step, >= 2 steps when B >= 2 (v7x 2 TCs) --
    bt = _pick_bt(B)
    num_steps = -(-B // bt)
    b_pad = num_steps * bt
    if b_pad > B:
        # Pad batch with degenerate (never-inside) faces; padded outputs sliced off.
        pad = jnp.zeros((b_pad - B, F, NFACE_PARAMS), jnp.float32)
        pad = pad.at[:, :, 2].set(jnp.float32(-1e18))
        packed = jnp.concatenate([packed, pad], axis=0)
    face_params = packed.reshape(b_pad, F * NFACE_PARAMS)     # SMEM: long axis last
    # TODO(synk): if B grows large, switch face_params to a per-step blocked SMEM
    # BlockSpec ((bt, F*NFACE_PARAMS)) instead of staging the whole array in SMEM.

    # ---- Pallas kernel: rasterize + shade `bt` full images per grid step ------
    kernel = functools.partial(_render_kernel, n_faces=F, bt_per_step=bt)
    out = pl.pallas_call(
        kernel,
        out_shape=jax.ShapeDtypeStruct((b_pad, NUM_OUT_CH, FLAT_SUB, FLAT_LANE),
                                       jnp.float32),
        grid_spec=pl.GridSpec(
            grid=(num_steps,),
            in_specs=[pl.BlockSpec(memory_space=pltpu.MemorySpace.SMEM)],
            out_specs=pl.BlockSpec(
                (bt, NUM_OUT_CH, FLAT_SUB, FLAT_LANE),
                lambda g: (g, 0, 0, 0)),
        ),
        compiler_params=pltpu.CompilerParams(
            dimension_semantics=("parallel",)),
    )(face_params)

    out = out[:B]                                                         # (B,5,8,128)
    images = jnp.transpose(out[:, :4].reshape(B, 4, H, W), (0, 2, 3, 1))  # (B,H,W,4)
    zbuf = out[:, 4].reshape(B, H, W)[..., None]                          # (B,H,W,1)
    return images, zbuf


if __name__ == "__main__":
    key = jax.random.PRNGKey(0)
    k1, k2 = jax.random.split(key)

    B, V, F = 2, 8, 12
    # Unit cube vertices, pushed to depth z around 1.5.
    cube = jnp.array(
        [[-0.5, -0.5, -0.5], [-0.5, -0.5, 0.5], [-0.5, 0.5, -0.5], [-0.5, 0.5, 0.5],
         [0.5, -0.5, -0.5], [0.5, -0.5, 0.5], [0.5, 0.5, -0.5], [0.5, 0.5, 0.5]],
        jnp.float32) + jnp.array([0.0, 0.0, 1.5], jnp.float32)
    verts = cube[None] + 0.05 * jax.random.normal(k1, (B, V, 3), jnp.float32)

    faces = jnp.array(
        [[0, 1, 3], [0, 3, 2],
         [4, 6, 7], [4, 7, 5],
         [0, 4, 5], [0, 5, 1],
         [2, 3, 7], [2, 7, 6],
         [0, 2, 6], [0, 6, 4],
         [1, 5, 7], [1, 7, 3]], jnp.int32)

    face_albedo = jax.random.uniform(k2, (F, 3), jnp.float32)
    light_dir = jnp.array([0.0, 0.0, -1.0], jnp.float32)

    images, zbuf = mesh_renderer_with_depth(verts, faces, face_albedo, light_dir)
    jax.block_until_ready((images, zbuf))

    assert images.shape == (B, H, W, 4) and images.dtype == jnp.float32
    assert zbuf.shape == (B, H, W, 1) and zbuf.dtype == jnp.float32
    assert bool(jnp.all(jnp.isfinite(images))) and bool(jnp.all(jnp.isfinite(zbuf)))
    # some pixels covered by the cube, some background (-1)
    assert bool(jnp.any(zbuf > 0.0)) and bool(jnp.any(zbuf == BACKGROUND_Z))
    print("KERNEL_OK")
</pallas_src>

<mosaic_0001>
module attributes {stable_mosaic.version = 11 : i64} {
  func.func @_render_kernel(%arg0: i32, %arg1: memref<2x192xf32, #tpu.memory_space<smem>>, %arg2: memref<1x5x8x128xf32, #tpu.memory_space<vmem>>) attributes {dimension_semantics = [#tpu.dimension_semantics<parallel>], iteration_bounds = array<i64: 2>, scalar_prefetch = 0 : i64, scratch_operands = 0 : i64, tpu.core_type = #tpu.core_type<tc>, window_params = [{transform_indices = @transform_0, window_bounds = array<i64: 2, 192>}, {transform_indices = @transform_1, window_bounds = array<i64: 1, 5, 8, 128>}]} {
    %0 = tpu.iota {dimensions = array<i32: 0>} : vector<8x128xi32>
    %1 = tpu.iota {dimensions = array<i32: 1>} : vector<8x128xi32>
    %c128_i32 = arith.constant 128 : i32
    %2 = vector.broadcast %c128_i32 : i32 to vector<8x128xi32>
    %3 = arith.muli %0, %2 : vector<8x128xi32>
    %4 = arith.addi %3, %1 : vector<8x128xi32>
    %c31_i32 = arith.constant 31 : i32
    %5 = vector.broadcast %c31_i32 : i32 to vector<8x128xi32>
    %6 = arith.andi %4, %5 : vector<8x128xi32>
    %7 = arith.sitofp %6 : vector<8x128xi32> to vector<8x128xf32>
    %c5_i32 = arith.constant 5 : i32
    %8 = vector.broadcast %c5_i32 : i32 to vector<8x128xi32>
    %9 = arith.shrsi %4, %8 : vector<8x128xi32>
    %10 = arith.sitofp %9 : vector<8x128xi32> to vector<8x128xf32>
    %cst = arith.constant 5.000000e-01 : f32
    %11 = vector.broadcast %cst : f32 to vector<8x128xf32>
    %12 = arith.addf %7, %11 : vector<8x128xf32>
    %cst_0 = arith.constant 6.250000e-02 : f32
    %13 = vector.broadcast %cst_0 : f32 to vector<8x128xf32>
    %14 = arith.mulf %12, %13 : vector<8x128xf32>
    %cst_1 = arith.constant 1.000000e+00 : f32
    %15 = vector.broadcast %cst_1 : f32 to vector<8x128xf32>
    %16 = arith.subf %14, %15 : vector<8x128xf32>
    %cst_2 = arith.constant 5.000000e-01 : f32
    %17 = vector.broadcast %cst_2 : f32 to vector<8x128xf32>
    %18 = arith.addf %10, %17 : vector<8x128xf32>
    %cst_3 = arith.constant 6.250000e-02 : f32
    %19 = vector.broadcast %cst_3 : f32 to vector<8x128xf32>
    %20 = arith.mulf %18, %19 : vector<8x128xf32>
    %cst_4 = arith.constant 1.000000e+00 : f32
    %21 = vector.broadcast %cst_4 : f32 to vector<8x128xf32>
    %22 = arith.subf %21, %20 : vector<8x128xf32>
    %cst_5 = arith.constant 1.000000e+30 : f32
    %23 = vector.broadcast %cst_5 : f32 to vector<8x128xf32>
    %cst_6 = arith.constant 0.000000e+00 : f32
    %24 = vector.broadcast %cst_6 : f32 to vector<8x128xf32>
    %c1_i32 = arith.constant 1 : i32
    %25 = arith.muli %arg0, %c1_i32 : i32
    %c0_i32 = arith.constant 0 : i32
    %26 = arith.addi %25, %c0_i32 : i32
    %27 = arith.index_cast %26 : i32 to index
    %c0 = arith.constant 0 : index
    %28 = memref.load %arg1[%27, %c0] : memref<2x192xf32, #tpu.memory_space<smem>>
    %29 = arith.index_cast %26 : i32 to index
    %c1 = arith.constant 1 : index
    %30 = memref.load %arg1[%29, %c1] : memref<2x192xf32, #tpu.memory_space<smem>>
    %31 = arith.index_cast %26 : i32 to index
    %c2 = arith.constant 2 : index
    %32 = memref.load %arg1[%31, %c2] : memref<2x192xf32, #tpu.memory_space<smem>>
    %33 = arith.index_cast %26 : i32 to index
    %c3 = arith.constant 3 : index
    %34 = memref.load %arg1[%33, %c3] : memref<2x192xf32, #tpu.memory_space<smem>>
    %35 = arith.index_cast %26 : i32 to index
    %c4 = arith.constant 4 : index
    %36 = memref.load %arg1[%35, %c4] : memref<2x192xf32, #tpu.memory_space<smem>>
    %37 = arith.index_cast %26 : i32 to index
    %c5 = arith.constant 5 : index
    %38 = memref.load %arg1[%37, %c5] : memref<2x192xf32, #tpu.memory_space<smem>>
    %39 = arith.index_cast %26 : i32 to index
    %c6 = arith.constant 6 : index
    %40 = memref.load %arg1[%39, %c6] : memref<2x192xf32, #tpu.memory_space<smem>>
    %41 = arith.index_cast %26 : i32 to index
    %c7 = arith.constant 7 : index
    %42 = memref.load %arg1[%41, %c7] : memref<2x192xf32, #tpu.memory_space<smem>>
    %43 = arith.index_cast %26 : i32 to index
    %c8 = arith.constant 8 : index
    %44 = memref.load %arg1[%43, %c8] : memref<2x192xf32, #tpu.memory_space<smem>>
    %45 = arith.index_cast %26 : i32 to index
    %c9 = arith.constant 9 : index
    %46 = memref.load %arg1[%45, %c9] : memref<2x192xf32, #tpu.memory_space<smem>>
    %47 = arith.index_cast %26 : i32 to index
    %c10 = arith.constant 10 : index
    %48 = memref.load %arg1[%47, %c10] : memref<2x192xf32, #tpu.memory_space<smem>>
    %49 = vector.broadcast %28 : f32 to vector<8x128xf32>
    %50 = arith.mulf %49, %16 : vector<8x128xf32>
    %51 = vector.broadcast %30 : f32 to vector<8x128xf32>
    %52 = arith.mulf %51, %22 : vector<8x128xf32>
    %53 = arith.addf %50, %52 : vector<8x128xf32>
    %54 = vector.broadcast %32 : f32 to vector<8x128xf32>
    %55 = arith.addf %53, %54 : vector<8x128xf32>
    %56 = vector.broadcast %34 : f32 to vector<8x128xf32>
    %57 = arith.mulf %56, %16 : vector<8x128xf32>
    %58 = vector.broadcast %36 : f32 to vector<8x128xf32>
    %59 = arith.mulf %58, %22 : vector<8x128xf32>
    %60 = arith.addf %57, %59 : vector<8x128xf32>
    %61 = vector.broadcast %38 : f32 to vector<8x128xf32>
    %62 = arith.addf %60, %61 : vector<8x128xf32>
    %63 = vector.broadcast %40 : f32 to vector<8x128xf32>
    %64 = arith.subf %63, %55 : vector<8x128xf32>
    %65 = arith.subf %64, %62 : vector<8x128xf32>
    %cst_7 = arith.constant 0.000000e+00 : f32
    %66 = vector.broadcast %cst_7 : f32 to vector<8x128xf32>
    %67 = arith.cmpf oge, %55, %66 : vector<8x128xf32>
    %cst_8 = arith.constant 0.000000e+00 : f32
    %68 = vector.broadcast %cst_8 : f32 to vector<8x128xf32>
    %69 = arith.cmpf oge, %62, %68 : vector<8x128xf32>
    %70 = arith.andi %67, %69 : vector<8x128xi1>
    %cst_9 = arith.constant 0.000000e+00 : f32
    %71 = vector.broadcast %cst_9 : f32 to vector<8x128xf32>
    %72 = arith.cmpf oge, %65, %71 : vector<8x128xf32>
    %73 = arith.andi %70, %72 : vector<8x128xi1>
    %74 = vector.broadcast %42 : f32 to vector<8x128xf32>
    %75 = arith.mulf %74, %16 : vector<8x128xf32>
    %76 = vector.broadcast %44 : f32 to vector<8x128xf32>
    %77 = arith.mulf %76, %22 : vector<8x128xf32>
    %78 = arith.addf %75, %77 : vector<8x128xf32>
    %79 = vector.broadcast %46 : f32 to vector<8x128xf32>
    %80 = arith.addf %78, %79 : vector<8x128xf32>
    %81 = arith.cmpf olt, %80, %23 : vector<8x128xf32>
    %82 = arith.andi %73, %81 : vector<8x128xi1>
    %83 = arith.select %82, %80, %23 : vector<8x128xi1>, vector<8x128xf32>
    %84 = vector.broadcast %48 : f32 to vector<8x128xf32>
    %85 = arith.select %82, %84, %24 : vector<8x128xi1>, vector<8x128xf32>
    %86 = arith.index_cast %26 : i32 to index
    %c16 = arith.constant 16 : index
    %87 = memref.load %arg1[%86, %c16] : memref<2x192xf32, #tpu.memory_space<smem>>
    %88 = arith.index_cast %26 : i32 to index
    %c17 = arith.constant 17 : index
    %89 = memref.load %arg1[%88, %c17] : memref<2x192xf32, #tpu.memory_space<smem>>
    %90 = arith.index_cast %26 : i32 to index
    %c18 = arith.constant 18 : index
    %91 = memref.load %arg1[%90, %c18] : memref<2x192xf32, #tpu.memory_space<smem>>
    %92 = arith.index_cast %26 : i32 to index
    %c19 = arith.constant 19 : index
    %93 = memref.load %arg1[%92, %c19] : memref<2x192xf32, #tpu.memory_space<smem>>
    %94 = arith.index_cast %26 : i32 to index
    %c20 = arith.constant 20 : index
    %95 = memref.load %arg1[%94, %c20] : memref<2x192xf32, #tpu.memory_space<smem>>
    %96 = arith.index_cast %26 : i32 to index
    %c21 = arith.constant 21 : index
    %97 = memref.load %arg1[%96, %c21] : memref<2x192xf32, #tpu.memory_space<smem>>
    %98 = arith.index_cast %26 : i32 to index
    %c22 = arith.constant 22 : index
    %99 = memref.load %arg1[%98, %c22] : memref<2x192xf32, #tpu.memory_space<smem>>
    %100 = arith.index_cast %26 : i32 to index
    %c23 = arith.constant 23 : index
    %101 = memref.load %arg1[%100, %c23] : memref<2x192xf32, #tpu.memory_space<smem>>
    %102 = arith.index_cast %26 : i32 to index
    %c24 = arith.constant 24 : index
    %103 = memref.load %arg1[%102, %c24] : memref<2x192xf32, #tpu.memory_space<smem>>
    %104 = arith.index_cast %26 : i32 to index
    %c25 = arith.constant 25 : index
    %105 = memref.load %arg1[%104, %c25] : memref<2x192xf32, #tpu.memory_space<smem>>
    %106 = arith.index_cast %26 : i32 to index
    %c26 = arith.constant 26 : index
    %107 = memref.load %arg1[%106, %c26] : memref<2x192xf32, #tpu.memory_space<smem>>
    %108 = vector.broadcast %87 : f32 to vector<8x128xf32>
    %109 = arith.mulf %108, %16 : vector<8x128xf32>
    %110 = vector.broadcast %89 : f32 to vector<8x128xf32>
    %111 = arith.mulf %110, %22 : vector<8x128xf32>
    %112 = arith.addf %109, %111 : vector<8x128xf32>
    %113 = vector.broadcast %91 : f32 to vector<8x128xf32>
    %114 = arith.addf %112, %113 : vector<8x128xf32>
    %115 = vector.broadcast %93 : f32 to vector<8x128xf32>
    %116 = arith.mulf %115, %16 : vector<8x128xf32>
    %117 = vector.broadcast %95 : f32 to vector<8x128xf32>
    %118 = arith.mulf %117, %22 : vector<8x128xf32>
    %119 = arith.addf %116, %118 : vector<8x128xf32>
    %120 = vector.broadcast %97 : f32 to vector<8x128xf32>
    %121 = arith.addf %119, %120 : vector<8x128xf32>
    %122 = vector.broadcast %99 : f32 to vector<8x128xf32>
    %123 = arith.subf %122, %114 : vector<8x128xf32>
    %124 = arith.subf %123, %121 : vector<8x128xf32>
    %cst_10 = arith.constant 0.000000e+00 : f32
    %125 = vector.broadcast %cst_10 : f32 to vector<8x128xf32>
    %126 = arith.cmpf oge, %114, %125 : vector<8x128xf32>
    %cst_11 = arith.constant 0.000000e+00 : f32
    %127 = vector.broadcast %cst_11 : f32 to vector<8x128xf32>
    %128 = arith.cmpf oge, %121, %127 : vector<8x128xf32>
    %129 = arith.andi %126, %128 : vector<8x128xi1>
    %cst_12 = arith.constant 0.000000e+00 : f32
    %130 = vector.broadcast %cst_12 : f32 to vector<8x128xf32>
    %131 = arith.cmpf oge, %124, %130 : vector<8x128xf32>
    %132 = arith.andi %129, %131 : vector<8x128xi1>
    %133 = vector.broadcast %101 : f32 to vector<8x128xf32>
    %134 = arith.mulf %133, %16 : vector<8x128xf32>
    %135 = vector.broadcast %103 : f32 to vector<8x128xf32>
    %136 = arith.mulf %135, %22 : vector<8x128xf32>
    %137 = arith.addf %134, %136 : vector<8x128xf32>
    %138 = vector.broadcast %105 : f32 to vector<8x128xf32>
    %139 = arith.addf %137, %138 : vector<8x128xf32>
    %140 = arith.cmpf olt, %139, %83 : vector<8x128xf32>
    %141 = arith.andi %132, %140 : vector<8x128xi1>
    %142 = arith.select %141, %139, %83 : vector<8x128xi1>, vector<8x128xf32>
    %143 = vector.broadcast %107 : f32 to vector<8x128xf32>
    %144 = arith.select %141, %143, %85 : vector<8x128xi1>, vector<8x128xf32>
    %145 = arith.index_cast %26 : i32 to index
    %c32 = arith.constant 32 : index
    %146 = memref.load %arg1[%145, %c32] : memref<2x192xf32, #tpu.memory_space<smem>>
    %147 = arith.index_cast %26 : i32 to index
    %c33 = arith.constant 33 : index
    %148 = memref.load %arg1[%147, %c33] : memref<2x192xf32, #tpu.memory_space<smem>>
    %149 = arith.index_cast %26 : i32 to index
    %c34 = arith.constant 34 : index
    %150 = memref.load %arg1[%149, %c34] : memref<2x192xf32, #tpu.memory_space<smem>>
    %151 = arith.index_cast %26 : i32 to index
    %c35 = arith.constant 35 : index
    %152 = memref.load %arg1[%151, %c35] : memref<2x192xf32, #tpu.memory_space<smem>>
    %153 = arith.index_cast %26 : i32 to index
    %c36 = arith.constant 36 : index
    %154 = memref.load %arg1[%153, %c36] : memref<2x192xf32, #tpu.memory_space<smem>>
    %155 = arith.index_cast %26 : i32 to index
    %c37 = arith.constant 37 : index
    %156 = memref.load %arg1[%155, %c37] : memref<2x192xf32, #tpu.memory_space<smem>>
    %157 = arith.index_cast %26 : i32 to index
    %c38 = arith.constant 38 : index
    %158 = memref.load %arg1[%157, %c38] : memref<2x192xf32, #tpu.memory_space<smem>>
    %159 = arith.index_cast %26 : i32 to index
    %c39 = arith.constant 39 : index
    %160 = memref.load %arg1[%159, %c39] : memref<2x192xf32, #tpu.memory_space<smem>>
    %161 = arith.index_cast %26 : i32 to index
    %c40 = arith.constant 40 : index
    %162 = memref.load %arg1[%161, %c40] : memref<2x192xf32, #tpu.memory_space<smem>>
    %163 = arith.index_cast %26 : i32 to index
    %c41 = arith.constant 41 : index
    %164 = memref.load %arg1[%163, %c41] : memref<2x192xf32, #tpu.memory_space<smem>>
    %165 = arith.index_cast %26 : i32 to index
    %c42 = arith.constant 42 : index
    %166 = memref.load %arg1[%165, %c42] : memref<2x192xf32, #tpu.memory_space<smem>>
    %167 = vector.broadcast %146 : f32 to vector<8x128xf32>
    %168 = arith.mulf %167, %16 : vector<8x128xf32>
    %169 = vector.broadcast %148 : f32 to vector<8x128xf32>
    %170 = arith.mulf %169, %22 : vector<8x128xf32>
    %171 = arith.addf %168, %170 : vector<8x128xf32>
    %172 = vector.broadcast %150 : f32 to vector<8x128xf32>
    %173 = arith.addf %171, %172 : vector<8x128xf32>
    %174 = vector.broadcast %152 : f32 to vector<8x128xf32>
    %175 = arith.mulf %174, %16 : vector<8x128xf32>
    %176 = vector.broadcast %154 : f32 to vector<8x128xf32>
    %177 = arith.mulf %176, %22 : vector<8x128xf32>
    %178 = arith.addf %175, %177 : vector<8x128xf32>
    %179 = vector.broadcast %156 : f32 to vector<8x128xf32>
    %180 = arith.addf %178, %179 : vector<8x128xf32>
    %181 = vector.broadcast %158 : f32 to vector<8x128xf32>
    %182 = arith.subf %181, %173 : vector<8x128xf32>
    %183 = arith.subf %182, %180 : vector<8x128xf32>
    %cst_13 = arith.constant 0.000000e+00 : f32
    %184 = vector.broadcast %cst_13 : f32 to vector<8x128xf32>
    %185 = arith.cmpf oge, %173, %184 : vector<8x128xf32>
    %cst_14 = arith.constant 0.000000e+00 : f32
    %186 = vector.broadcast %cst_14 : f32 to vector<8x128xf32>
    %187 = arith.cmpf oge, %180, %186 : vector<8x128xf32>
    %188 = arith.andi %185, %187 : vector<8x128xi1>
    %cst_15 = arith.constant 0.000000e+00 : f32
    %189 = vector.broadcast %cst_15 : f32 to vector<8x128xf32>
    %190 = arith.cmpf oge, %183, %189 : vector<8x128xf32>
    %191 = arith.andi %188, %190 : vector<8x128xi1>
    %192 = vector.broadcast %160 : f32 to vector<8x128xf32>
    %193 = arith.mulf %192, %16 : vector<8x128xf32>
    %194 = vector.broadcast %162 : f32 to vector<8x128xf32>
    %195 = arith.mulf %194, %22 : vector<8x128xf32>
    %196 = arith.addf %193, %195 : vector<8x128xf32>
    %197 = vector.broadcast %164 : f32 to vector<8x128xf32>
    %198 = arith.addf %196, %197 : vector<8x128xf32>
    %199 = arith.cmpf olt, %198, %142 : vector<8x128xf32>
    %200 = arith.andi %191, %199 : vector<8x128xi1>
    %201 = arith.select %200, %198, %142 : vector<8x128xi1>, vector<8x128xf32>
    %202 = vector.broadcast %166 : f32 to vector<8x128xf32>
    %203 = arith.select %200, %202, %144 : vector<8x128xi1>, vector<8x128xf32>
    %204 = arith.index_cast %26 : i32 to index
    %c48 = arith.constant 48 : index
    %205 = memref.load %arg1[%204, %c48] : memref<2x192xf32, #tpu.memory_space<smem>>
    %206 = arith.index_cast %26 : i32 to index
    %c49 = arith.constant 49 : index
    %207 = memref.load %arg1[%206, %c49] : memref<2x192xf32, #tpu.memory_space<smem>>
    %208 = arith.index_cast %26 : i32 to index
    %c50 = arith.constant 50 : index
    %209 = memref.load %arg1[%208, %c50] : memref<2x192xf32, #tpu.memory_space<smem>>
    %210 = arith.index_cast %26 : i32 to index
    %c51 = arith.constant 51 : index
    %211 = memref.load %arg1[%210, %c51] : memref<2x192xf32, #tpu.memory_space<smem>>
    %212 = arith.index_cast %26 : i32 to index
    %c52 = arith.constant 52 : index
    %213 = memref.load %arg1[%212, %c52] : memref<2x192xf32, #tpu.memory_space<smem>>
    %214 = arith.index_cast %26 : i32 to index
    %c53 = arith.constant 53 : index
    %215 = memref.load %arg1[%214, %c53] : memref<2x192xf32, #tpu.memory_space<smem>>
    %216 = arith.index_cast %26 : i32 to index
    %c54 = arith.constant 54 : index
    %217 = memref.load %arg1[%216, %c54] : memref<2x192xf32, #tpu.memory_space<smem>>
    %218 = arith.index_cast %26 : i32 to index
    %c55 = arith.constant 55 : index
    %219 = memref.load %arg1[%218, %c55] : memref<2x192xf32, #tpu.memory_space<smem>>
    %220 = arith.index_cast %26 : i32 to index
    %c56 = arith.constant 56 : index
    %221 = memref.load %arg1[%220, %c56] : memref<2x192xf32, #tpu.memory_space<smem>>
    %222 = arith.index_cast %26 : i32 to index
    %c57 = arith.constant 57 : index
    %223 = memref.load %arg1[%222, %c57] : memref<2x192xf32, #tpu.memory_space<smem>>
    %224 = arith.index_cast %26 : i32 to index
    %c58 = arith.constant 58 : index
    %225 = memref.load %arg1[%224, %c58] : memref<2x192xf32, #tpu.memory_space<smem>>
    %226 = vector.broadcast %205 : f32 to vector<8x128xf32>
    %227 = arith.mulf %226, %16 : vector<8x128xf32>
    %228 = vector.broadcast %207 : f32 to vector<8x128xf32>
    %229 = arith.mulf %228, %22 : vector<8x128xf32>
    %230 = arith.addf %227, %229 : vector<8x128xf32>
    %231 = vector.broadcast %209 : f32 to vector<8x128xf32>
    %232 = arith.addf %230, %231 : vector<8x128xf32>
    %233 = vector.broadcast %211 : f32 to vector<8x128xf32>
    %234 = arith.mulf %233, %16 : vector<8x128xf32>
    %235 = vector.broadcast %213 : f32 to vector<8x128xf32>
    %236 = arith.mulf %235, %22 : vector<8x128xf32>
    %237 = arith.addf %234, %236 : vector<8x128xf32>
    %238 = vector.broadcast %215 : f32 to vector<8x128xf32>
    %239 = arith.addf %237, %238 : vector<8x128xf32>
    %240 = vector.broadcast %217 : f32 to vector<8x128xf32>
    %241 = arith.subf %240, %232 : vector<8x128xf32>
    %242 = arith.subf %241, %239 : vector<8x128xf32>
    %cst_16 = arith.constant 0.000000e+00 : f32
    %243 = vector.broadcast %cst_16 : f32 to vector<8x128xf32>
    %244 = arith.cmpf oge, %232, %243 : vector<8x128xf32>
    %cst_17 = arith.constant 0.000000e+00 : f32
    %245 = vector.broadcast %cst_17 : f32 to vector<8x128xf32>
    %246 = arith.cmpf oge, %239, %245 : vector<8x128xf32>
    %247 = arith.andi %244, %246 : vector<8x128xi1>
    %cst_18 = arith.constant 0.000000e+00 : f32
    %248 = vector.broadcast %cst_18 : f32 to vector<8x128xf32>
    %249 = arith.cmpf oge, %242, %248 : vector<8x128xf32>
    %250 = arith.andi %247, %249 : vector<8x128xi1>
    %251 = vector.broadcast %219 : f32 to vector<8x128xf32>
    %252 = arith.mulf %251, %16 : vector<8x128xf32>
    %253 = vector.broadcast %221 : f32 to vector<8x128xf32>
    %254 = arith.mulf %253, %22 : vector<8x128xf32>
    %255 = arith.addf %252, %254 : vector<8x128xf32>
    %256 = vector.broadcast %223 : f32 to vector<8x128xf32>
    %257 = arith.addf %255, %256 : vector<8x128xf32>
    %258 = arith.cmpf olt, %257, %201 : vector<8x128xf32>
    %259 = arith.andi %250, %258 : vector<8x128xi1>
    %260 = arith.select %259, %257, %201 : vector<8x128xi1>, vector<8x128xf32>
    %261 = vector.broadcast %225 : f32 to vector<8x128xf32>
    %262 = arith.select %259, %261, %203 : vector<8x128xi1>, vector<8x128xf32>
    %263 = arith.index_cast %26 : i32 to index
    %c64 = arith.constant 64 : index
    %264 = memref.load %arg1[%263, %c64] : memref<2x192xf32, #tpu.memory_space<smem>>
    %265 = arith.index_cast %26 : i32 to index
    %c65 = arith.constant 65 : index
    %266 = memref.load %arg1[%265, %c65] : memref<2x192xf32, #tpu.memory_space<smem>>
    %267 = arith.index_cast %26 : i32 to index
    %c66 = arith.constant 66 : index
    %268 = memref.load %arg1[%267, %c66] : memref<2x192xf32, #tpu.memory_space<smem>>
    %269 = arith.index_cast %26 : i32 to index
    %c67 = arith.constant 67 : index
    %270 = memref.load %arg1[%269, %c67] : memref<2x192xf32, #tpu.memory_space<smem>>
    %271 = arith.index_cast %26 : i32 to index
    %c68 = arith.constant 68 : index
    %272 = memref.load %arg1[%271, %c68] : memref<2x192xf32, #tpu.memory_space<smem>>
    %273 = arith.index_cast %26 : i32 to index
    %c69 = arith.constant 69 : index
    %274 = memref.load %arg1[%273, %c69] : memref<2x192xf32, #tpu.memory_space<smem>>
    %275 = arith.index_cast %26 : i32 to index
    %c70 = arith.constant 70 : index
    %276 = memref.load %arg1[%275, %c70] : memref<2x192xf32, #tpu.memory_space<smem>>
    %277 = arith.index_cast %26 : i32 to index
    %c71 = arith.constant 71 : index
    %278 = memref.load %arg1[%277, %c71] : memref<2x192xf32, #tpu.memory_space<smem>>
    %279 = arith.index_cast %26 : i32 to index
    %c72 = arith.constant 72 : index
    %280 = memref.load %arg1[%279, %c72] : memref<2x192xf32, #tpu.memory_space<smem>>
    %281 = arith.index_cast %26 : i32 to index
    %c73 = arith.constant 73 : index
    %282 = memref.load %arg1[%281, %c73] : memref<2x192xf32, #tpu.memory_space<smem>>
    %283 = arith.index_cast %26 : i32 to index
    %c74 = arith.constant 74 : index
    %284 = memref.load %arg1[%283, %c74] : memref<2x192xf32, #tpu.memory_space<smem>>
    %285 = vector.broadcast %264 : f32 to vector<8x128xf32>
    %286 = arith.mulf %285, %16 : vector<8x128xf32>
    %287 = vector.broadcast %266 : f32 to vector<8x128xf32>
    %288 = arith.mulf %287, %22 : vector<8x128xf32>
    %289 = arith.addf %286, %288 : vector<8x128xf32>
    %290 = vector.broadcast %268 : f32 to vector<8x128xf32>
    %291 = arith.addf %289, %290 : vector<8x128xf32>
    %292 = vector.broadcast %270 : f32 to vector<8x128xf32>
    %293 = arith.mulf %292, %16 : vector<8x128xf32>
    %294 = vector.broadcast %272 : f32 to vector<8x128xf32>
    %295 = arith.mulf %294, %22 : vector<8x128xf32>
    %296 = arith.addf %293, %295 : vector<8x128xf32>
    %297 = vector.broadcast %274 : f32 to vector<8x128xf32>
    %298 = arith.addf %296, %297 : vector<8x128xf32>
    %299 = vector.broadcast %276 : f32 to vector<8x128xf32>
    %300 = arith.subf %299, %291 : vector<8x128xf32>
    %301 = arith.subf %300, %298 : vector<8x128xf32>
    %cst_19 = arith.constant 0.000000e+00 : f32
    %302 = vector.broadcast %cst_19 : f32 to vector<8x128xf32>
    %303 = arith.cmpf oge, %291, %302 : vector<8x128xf32>
    %cst_20 = arith.constant 0.000000e+00 : f32
    %304 = vector.broadcast %cst_20 : f32 to vector<8x128xf32>
    %305 = arith.cmpf oge, %298, %304 : vector<8x128xf32>
    %306 = arith.andi %303, %305 : vector<8x128xi1>
    %cst_21 = arith.constant 0.000000e+00 : f32
    %307 = vector.broadcast %cst_21 : f32 to vector<8x128xf32>
    %308 = arith.cmpf oge, %301, %307 : vector<8x128xf32>
    %309 = arith.andi %306, %308 : vector<8x128xi1>
    %310 = vector.broadcast %278 : f32 to vector<8x128xf32>
    %311 = arith.mulf %310, %16 : vector<8x128xf32>
    %312 = vector.broadcast %280 : f32 to vector<8x128xf32>
    %313 = arith.mulf %312, %22 : vector<8x128xf32>
    %314 = arith.addf %311, %313 : vector<8x128xf32>
    %315 = vector.broadcast %282 : f32 to vector<8x128xf32>
    %316 = arith.addf %314, %315 : vector<8x128xf32>
    %317 = arith.cmpf olt, %316, %260 : vector<8x128xf32>
    %318 = arith.andi %309, %317 : vector<8x128xi1>
    %319 = arith.select %318, %316, %260 : vector<8x128xi1>, vector<8x128xf32>
    %320 = vector.broadcast %284 : f32 to vector<8x128xf32>
    %321 = arith.select %318, %320, %262 : vector<8x128xi1>, vector<8x128xf32>
    %322 = arith.index_cast %26 : i32 to index
    %c80 = arith.constant 80 : index
    %323 = memref.load %arg1[%322, %c80] : memref<2x192xf32, #tpu.memory_space<smem>>
    %324 = arith.index_cast %26 : i32 to index
    %c81 = arith.constant 81 : index
    %325 = memref.load %arg1[%324, %c81] : memref<2x192xf32, #tpu.memory_space<smem>>
    %326 = arith.index_cast %26 : i32 to index
    %c82 = arith.constant 82 : index
    %327 = memref.load %arg1[%326, %c82] : memref<2x192xf32, #tpu.memory_space<smem>>
    %328 = arith.index_cast %26 : i32 to index
    %c83 = arith.constant 83 : index
    %329 = memref.load %arg1[%328, %c83] : memref<2x192xf32, #tpu.memory_space<smem>>
    %330 = arith.index_cast %26 : i32 to index
    %c84 = arith.constant 84 : index
    %331 = memref.load %arg1[%330, %c84] : memref<2x192xf32, #tpu.memory_space<smem>>
    %332 = arith.index_cast %26 : i32 to index
    %c85 = arith.constant 85 : index
    %333 = memref.load %arg1[%332, %c85] : memref<2x192xf32, #tpu.memory_space<smem>>
    %334 = arith.index_cast %26 : i32 to index
    %c86 = arith.constant 86 : index
    %335 = memref.load %arg1[%334, %c86] : memref<2x192xf32, #tpu.memory_space<smem>>
    %336 = arith.index_cast %26 : i32 to index
    %c87 = arith.constant 87 : index
    %337 = memref.load %arg1[%336, %c87] : memref<2x192xf32, #tpu.memory_space<smem>>
    %338 = arith.index_cast %26 : i32 to index
    %c88 = arith.constant 88 : index
    %339 = memref.load %arg1[%338, %c88] : memref<2x192xf32, #tpu.memory_space<smem>>
    %340 = arith.index_cast %26 : i32 to index
    %c89 = arith.constant 89 : index
    %341 = memref.load %arg1[%340, %c89] : memref<2x192xf32, #tpu.memory_space<smem>>
    %342 = arith.index_cast %26 : i32 to index
    %c90 = arith.constant 90 : index
    %343 = memref.load %arg1[%342, %c90] : memref<2x192xf32, #tpu.memory_space<smem>>
    %344 = vector.broadcast %323 : f32 to vector<8x128xf32>
    %345 = arith.mulf %344, %16 : vector<8x128xf32>
    %346 = vector.broadcast %325 : f32 to vector<8x128xf32>
    %347 = arith.mulf %346, %22 : vector<8x128xf32>
    %348 = arith.addf %345, %347 : vector<8x128xf32>
    %349 = vector.broadcast %327 : f32 to vector<8x128xf32>
    %350 = arith.addf %348, %349 : vector<8x128xf32>
    %351 = vector.broadcast %329 : f32 to vector<8x128xf32>
    %352 = arith.mulf %351, %16 : vector<8x128xf32>
    %353 = vector.broadcast %331 : f32 to vector<8x128xf32>
    %354 = arith.mulf %353, %22 : vector<8x128xf32>
    %355 = arith.addf %352, %354 : vector<8x128xf32>
    %356 = vector.broadcast %333 : f32 to vector<8x128xf32>
    %357 = arith.addf %355, %356 : vector<8x128xf32>
    %358 = vector.broadcast %335 : f32 to vector<8x128xf32>
    %359 = arith.subf %358, %350 : vector<8x128xf32>
    %360 = arith.subf %359, %357 : vector<8x128xf32>
    %cst_22 = arith.constant 0.000000e+00 : f32
    %361 = vector.broadcast %cst_22 : f32 to vector<8x128xf32>
    %362 = arith.cmpf oge, %350, %361 : vector<8x128xf32>
    %cst_23 = arith.constant 0.000000e+00 : f32
    %363 = vector.broadcast %cst_23 : f32 to vector<8x128xf32>
    %364 = arith.cmpf oge, %357, %363 : vector<8x128xf32>
    %365 = arith.andi %362, %364 : vector<8x128xi1>
    %cst_24 = arith.constant 0.000000e+00 : f32
    %366 = vector.broadcast %cst_24 : f32 to vector<8x128xf32>
    %367 = arith.cmpf oge, %360, %366 : vector<8x128xf32>
    %368 = arith.andi %365, %367 : vector<8x128xi1>
    %369 = vector.broadcast %337 : f32 to vector<8x128xf32>
    %370 = arith.mulf %369, %16 : vector<8x128xf32>
    %371 = vector.broadcast %339 : f32 to vector<8x128xf32>
    %372 = arith.mulf %371, %22 : vector<8x128xf32>
    %373 = arith.addf %370, %372 : vector<8x128xf32>
    %374 = vector.broadcast %341 : f32 to vector<8x128xf32>
    %375 = arith.addf %373, %374 : vector<8x128xf32>
    %376 = arith.cmpf olt, %375, %319 : vector<8x128xf32>
    %377 = arith.andi %368, %376 : vector<8x128xi1>
    %378 = arith.select %377, %375, %319 : vector<8x128xi1>, vector<8x128xf32>
    %379 = vector.broadcast %343 : f32 to vector<8x128xf32>
    %380 = arith.select %377, %379, %321 : vector<8x128xi1>, vector<8x128xf32>
    %381 = arith.index_cast %26 : i32 to index
    %c96 = arith.constant 96 : index
    %382 = memref.load %arg1[%381, %c96] : memref<2x192xf32, #tpu.memory_space<smem>>
    %383 = arith.index_cast %26 : i32 to index
    %c97 = arith.constant 97 : index
    %384 = memref.load %arg1[%383, %c97] : memref<2x192xf32, #tpu.memory_space<smem>>
    %385 = arith.index_cast %26 : i32 to index
    %c98 = arith.constant 98 : index
    %386 = memref.load %arg1[%385, %c98] : memref<2x192xf32, #tpu.memory_space<smem>>
    %387 = arith.index_cast %26 : i32 to index
    %c99 = arith.constant 99 : index
    %388 = memref.load %arg1[%387, %c99] : memref<2x192xf32, #tpu.memory_space<smem>>
    %389 = arith.index_cast %26 : i32 to index
    %c100 = arith.constant 100 : index
    %390 = memref.load %arg1[%389, %c100] : memref<2x192xf32, #tpu.memory_space<smem>>
    %391 = arith.index_cast %26 : i32 to index
    %c101 = arith.constant 101 : index
    %392 = memref.load %arg1[%391, %c101] : memref<2x192xf32, #tpu.memory_space<smem>>
    %393 = arith.index_cast %26 : i32 to index
    %c102 = arith.constant 102 : index
    %394 = memref.load %arg1[%393, %c102] : memref<2x192xf32, #tpu.memory_space<smem>>
    %395 = arith.index_cast %26 : i32 to index
    %c103 = arith.constant 103 : index
    %396 = memref.load %arg1[%395, %c103] : memref<2x192xf32, #tpu.memory_space<smem>>
    %397 = arith.index_cast %26 : i32 to index
    %c104 = arith.constant 104 : index
    %398 = memref.load %arg1[%397, %c104] : memref<2x192xf32, #tpu.memory_space<smem>>
    %399 = arith.index_cast %26 : i32 to index
    %c105 = arith.constant 105 : index
    %400 = memref.load %arg1[%399, %c105] : memref<2x192xf32, #tpu.memory_space<smem>>
    %401 = arith.index_cast %26 : i32 to index
    %c106 = arith.constant 106 : index
    %402 = memref.load %arg1[%401, %c106] : memref<2x192xf32, #tpu.memory_space<smem>>
    %403 = vector.broadcast %382 : f32 to vector<8x128xf32>
    %404 = arith.mulf %403, %16 : vector<8x128xf32>
    %405 = vector.broadcast %384 : f32 to vector<8x128xf32>
    %406 = arith.mulf %405, %22 : vector<8x128xf32>
    %407 = arith.addf %404, %406 : vector<8x128xf32>
    %408 = vector.broadcast %386 : f32 to vector<8x128xf32>
    %409 = arith.addf %407, %408 : vector<8x128xf32>
    %410 = vector.broadcast %388 : f32 to vector<8x128xf32>
    %411 = arith.mulf %410, %16 : vector<8x128xf32>
    %412 = vector.broadcast %390 : f32 to vector<8x128xf32>
    %413 = arith.mulf %412, %22 : vector<8x128xf32>
    %414 = arith.addf %411, %413 : vector<8x128xf32>
    %415 = vector.broadcast %392 : f32 to vector<8x128xf32>
    %416 = arith.addf %414, %415 : vector<8x128xf32>
    %417 = vector.broadcast %394 : f32 to vector<8x128xf32>
    %418 = arith.subf %417, %409 : vector<8x128xf32>
    %419 = arith.subf %418, %416 : vector<8x128xf32>
    %cst_25 = arith.constant 0.000000e+00 : f32
    %420 = vector.broadcast %cst_25 : f32 to vector<8x128xf32>
    %421 = arith.cmpf oge, %409, %420 : vector<8x128xf32>
    %cst_26 = arith.constant 0.000000e+00 : f32
    %422 = vector.broadcast %cst_26 : f32 to vector<8x128xf32>
    %423 = arith.cmpf oge, %416, %422 : vector<8x128xf32>
    %424 = arith.andi %421, %423 : vector<8x128xi1>
    %cst_27 = arith.constant 0.000000e+00 : f32
    %425 = vector.broadcast %cst_27 : f32 to vector<8x128xf32>
    %426 = arith.cmpf oge, %419, %425 : vector<8x128xf32>
    %427 = arith.andi %424, %426 : vector<8x128xi1>
    %428 = vector.broadcast %396 : f32 to vector<8x128xf32>
    %429 = arith.mulf %428, %16 : vector<8x128xf32>
    %430 = vector.broadcast %398 : f32 to vector<8x128xf32>
    %431 = arith.mulf %430, %22 : vector<8x128xf32>
    %432 = arith.addf %429, %431 : vector<8x128xf32>
    %433 = vector.broadcast %400 : f32 to vector<8x128xf32>
    %434 = arith.addf %432, %433 : vector<8x128xf32>
    %435 = arith.cmpf olt, %434, %378 : vector<8x128xf32>
    %436 = arith.andi %427, %435 : vector<8x128xi1>
    %437 = arith.select %436, %434, %378 : vector<8x128xi1>, vector<8x128xf32>
    %438 = vector.broadcast %402 : f32 to vector<8x128xf32>
    %439 = arith.select %436, %438, %380 : vector<8x128xi1>, vector<8x128xf32>
    %440 = arith.index_cast %26 : i32 to index
    %c112 = arith.constant 112 : index
    %441 = memref.load %arg1[%440, %c112] : memref<2x192xf32, #tpu.memory_space<smem>>
    %442 = arith.index_cast %26 : i32 to index
    %c113 = arith.constant 113 : index
    %443 = memref.load %arg1[%442, %c113] : memref<2x192xf32, #tpu.memory_space<smem>>
    %444 = arith.index_cast %26 : i32 to index
    %c114 = arith.constant 114 : index
    %445 = memref.load %arg1[%444, %c114] : memref<2x192xf32, #tpu.memory_space<smem>>
    %446 = arith.index_cast %26 : i32 to index
    %c115 = arith.constant 115 : index
    %447 = memref.load %arg1[%446, %c115] : memref<2x192xf32, #tpu.memory_space<smem>>
    %448 = arith.index_cast %26 : i32 to index
    %c116 = arith.constant 116 : index
    %449 = memref.load %arg1[%448, %c116] : memref<2x192xf32, #tpu.memory_space<smem>>
    %450 = arith.index_cast %26 : i32 to index
    %c117 = arith.constant 117 : index
    %451 = memref.load %arg1[%450, %c117] : memref<2x192xf32, #tpu.memory_space<smem>>
    %452 = arith.index_cast %26 : i32 to index
    %c118 = arith.constant 118 : index
    %453 = memref.load %arg1[%452, %c118] : memref<2x192xf32, #tpu.memory_space<smem>>
    %454 = arith.index_cast %26 : i32 to index
    %c119 = arith.constant 119 : index
    %455 = memref.load %arg1[%454, %c119] : memref<2x192xf32, #tpu.memory_space<smem>>
    %456 = arith.index_cast %26 : i32 to index
    %c120 = arith.constant 120 : index
    %457 = memref.load %arg1[%456, %c120] : memref<2x192xf32, #tpu.memory_space<smem>>
    %458 = arith.index_cast %26 : i32 to index
    %c121 = arith.constant 121 : index
    %459 = memref.load %arg1[%458, %c121] : memref<2x192xf32, #tpu.memory_space<smem>>
    %460 = arith.index_cast %26 : i32 to index
    %c122 = arith.constant 122 : index
    %461 = memref.load %arg1[%460, %c122] : memref<2x192xf32, #tpu.memory_space<smem>>
    %462 = vector.broadcast %441 : f32 to vector<8x128xf32>
    %463 = arith.mulf %462, %16 : vector<8x128xf32>
    %464 = vector.broadcast %443 : f32 to vector<8x128xf32>
    %465 = arith.mulf %464, %22 : vector<8x128xf32>
    %466 = arith.addf %463, %465 : vector<8x128xf32>
    %467 = vector.broadcast %445 : f32 to vector<8x128xf32>
    %468 = arith.addf %466, %467 : vector<8x128xf32>
    %469 = vector.broadcast %447 : f32 to vector<8x128xf32>
    %470 = arith.mulf %469, %16 : vector<8x128xf32>
    %471 = vector.broadcast %449 : f32 to vector<8x128xf32>
    %472 = arith.mulf %471, %22 : vector<8x128xf32>
    %473 = arith.addf %470, %472 : vector<8x128xf32>
    %474 = vector.broadcast %451 : f32 to vector<8x128xf32>
    %475 = arith.addf %473, %474 : vector<8x128xf32>
    %476 = vector.broadcast %453 : f32 to vector<8x128xf32>
    %477 = arith.subf %476, %468 : vector<8x128xf32>
    %478 = arith.subf %477, %475 : vector<8x128xf32>
    %cst_28 = arith.constant 0.000000e+00 : f32
    %479 = vector.broadcast %cst_28 : f32 to vector<8x128xf32>
    %480 = arith.cmpf oge, %468, %479 : vector<8x128xf32>
    %cst_29 = arith.constant 0.000000e+00 : f32
    %481 = vector.broadcast %cst_29 : f32 to vector<8x128xf32>
    %482 = arith.cmpf oge, %475, %481 : vector<8x128xf32>
    %483 = arith.andi %480, %482 : vector<8x128xi1>
    %cst_30 = arith.constant 0.000000e+00 : f32
    %484 = vector.broadcast %cst_30 : f32 to vector<8x128xf32>
    %485 = arith.cmpf oge, %478, %484 : vector<8x128xf32>
    %486 = arith.andi %483, %485 : vector<8x128xi1>
    %487 = vector.broadcast %455 : f32 to vector<8x128xf32>
    %488 = arith.mulf %487, %16 : vector<8x128xf32>
    %489 = vector.broadcast %457 : f32 to vector<8x128xf32>
    %490 = arith.mulf %489, %22 : vector<8x128xf32>
    %491 = arith.addf %488, %490 : vector<8x128xf32>
    %492 = vector.broadcast %459 : f32 to vector<8x128xf32>
    %493 = arith.addf %491, %492 : vector<8x128xf32>
    %494 = arith.cmpf olt, %493, %437 : vector<8x128xf32>
    %495 = arith.andi %486, %494 : vector<8x128xi1>
    %496 = arith.select %495, %493, %437 : vector<8x128xi1>, vector<8x128xf32>
    %497 = vector.broadcast %461 : f32 to vector<8x128xf32>
    %498 = arith.select %495, %497, %439 : vector<8x128xi1>, vector<8x128xf32>
    %499 = arith.index_cast %26 : i32 to index
    %c128 = arith.constant 128 : index
    %500 = memref.load %arg1[%499, %c128] : memref<2x192xf32, #tpu.memory_space<smem>>
    %501 = arith.index_cast %26 : i32 to index
    %c129 = arith.constant 129 : index
    %502 = memref.load %arg1[%501, %c129] : memref<2x192xf32, #tpu.memory_space<smem>>
    %503 = arith.index_cast %26 : i32 to index
    %c130 = arith.constant 130 : index
    %504 = memref.load %arg1[%503, %c130] : memref<2x192xf32, #tpu.memory_space<smem>>
    %505 = arith.index_cast %26 : i32 to index
    %c131 = arith.constant 131 : index
    %506 = memref.load %arg1[%505, %c131] : memref<2x192xf32, #tpu.memory_space<smem>>
    %507 = arith.index_cast %26 : i32 to index
    %c132 = arith.constant 132 : index
    %508 = memref.load %arg1[%507, %c132] : memref<2x192xf32, #tpu.memory_space<smem>>
    %509 = arith.index_cast %26 : i32 to index
    %c133 = arith.constant 133 : index
    %510 = memref.load %arg1[%509, %c133] : memref<2x192xf32, #tpu.memory_space<smem>>
    %511 = arith.index_cast %26 : i32 to index
    %c134 = arith.constant 134 : index
    %512 = memref.load %arg1[%511, %c134] : memref<2x192xf32, #tpu.memory_space<smem>>
    %513 = arith.index_cast %26 : i32 to index
    %c135 = arith.constant 135 : index
    %514 = memref.load %arg1[%513, %c135] : memref<2x192xf32, #tpu.memory_space<smem>>
    %515 = arith.index_cast %26 : i32 to index
    %c136 = arith.constant 136 : index
    %516 = memref.load %arg1[%515, %c136] : memref<2x192xf32, #tpu.memory_space<smem>>
    %517 = arith.index_cast %26 : i32 to index
    %c137 = arith.constant 137 : index
    %518 = memref.load %arg1[%517, %c137] : memref<2x192xf32, #tpu.memory_space<smem>>
    %519 = arith.index_cast %26 : i32 to index
    %c138 = arith.constant 138 : index
    %520 = memref.load %arg1[%519, %c138] : memref<2x192xf32, #tpu.memory_space<smem>>
    %521 = vector.broadcast %500 : f32 to vector<8x128xf32>
    %522 = arith.mulf %521, %16 : vector<8x128xf32>
    %523 = vector.broadcast %502 : f32 to vector<8x128xf32>
    %524 = arith.mulf %523, %22 : vector<8x128xf32>
    %525 = arith.addf %522, %524 : vector<8x128xf32>
    %526 = vector.broadcast %504 : f32 to vector<8x128xf32>
    %527 = arith.addf %525, %526 : vector<8x128xf32>
    %528 = vector.broadcast %506 : f32 to vector<8x128xf32>
    %529 = arith.mulf %528, %16 : vector<8x128xf32>
    %530 = vector.broadcast %508 : f32 to vector<8x128xf32>
    %531 = arith.mulf %530, %22 : vector<8x128xf32>
    %532 = arith.addf %529, %531 : vector<8x128xf32>
    %533 = vector.broadcast %510 : f32 to vector<8x128xf32>
    %534 = arith.addf %532, %533 : vector<8x128xf32>
    %535 = vector.broadcast %512 : f32 to vector<8x128xf32>
    %536 = arith.subf %535, %527 : vector<8x128xf32>
    %537 = arith.subf %536, %534 : vector<8x128xf32>
    %cst_31 = arith.constant 0.000000e+00 : f32
    %538 = vector.broadcast %cst_31 : f32 to vector<8x128xf32>
    %539 = arith.cmpf oge, %527, %538 : vector<8x128xf32>
    %cst_32 = arith.constant 0.000000e+00 : f32
    %540 = vector.broadcast %cst_32 : f32 to vector<8x128xf32>
    %541 = arith.cmpf oge, %534, %540 : vector<8x128xf32>
    %542 = arith.andi %539, %541 : vector<8x128xi1>
    %cst_33 = arith.constant 0.000000e+00 : f32
    %543 = vector.broadcast %cst_33 : f32 to vector<8x128xf32>
    %544 = arith.cmpf oge, %537, %543 : vector<8x128xf32>
    %545 = arith.andi %542, %544 : vector<8x128xi1>
    %546 = vector.broadcast %514 : f32 to vector<8x128xf32>
    %547 = arith.mulf %546, %16 : vector<8x128xf32>
    %548 = vector.broadcast %516 : f32 to vector<8x128xf32>
    %549 = arith.mulf %548, %22 : vector<8x128xf32>
    %550 = arith.addf %547, %549 : vector<8x128xf32>
    %551 = vector.broadcast %518 : f32 to vector<8x128xf32>
    %552 = arith.addf %550, %551 : vector<8x128xf32>
    %553 = arith.cmpf olt, %552, %496 : vector<8x128xf32>
    %554 = arith.andi %545, %553 : vector<8x128xi1>
    %555 = arith.select %554, %552, %496 : vector<8x128xi1>, vector<8x128xf32>
    %556 = vector.broadcast %520 : f32 to vector<8x128xf32>
    %557 = arith.select %554, %556, %498 : vector<8x128xi1>, vector<8x128xf32>
    %558 = arith.index_cast %26 : i32 to index
    %c144 = arith.constant 144 : index
    %559 = memref.load %arg1[%558, %c144] : memref<2x192xf32, #tpu.memory_space<smem>>
    %560 = arith.index_cast %26 : i32 to index
    %c145 = arith.constant 145 : index
    %561 = memref.load %arg1[%560, %c145] : memref<2x192xf32, #tpu.memory_space<smem>>
    %562 = arith.index_cast %26 : i32 to index
    %c146 = arith.constant 146 : index
    %563 = memref.load %arg1[%562, %c146] : memref<2x192xf32, #tpu.memory_space<smem>>
    %564 = arith.index_cast %26 : i32 to index
    %c147 = arith.constant 147 : index
    %565 = memref.load %arg1[%564, %c147] : memref<2x192xf32, #tpu.memory_space<smem>>
    %566 = arith.index_cast %26 : i32 to index
    %c148 = arith.constant 148 : index
    %567 = memref.load %arg1[%566, %c148] : memref<2x192xf32, #tpu.memory_space<smem>>
    %568 = arith.index_cast %26 : i32 to index
    %c149 = arith.constant 149 : index
    %569 = memref.load %arg1[%568, %c149] : memref<2x192xf32, #tpu.memory_space<smem>>
    %570 = arith.index_cast %26 : i32 to index
    %c150 = arith.constant 150 : index
    %571 = memref.load %arg1[%570, %c150] : memref<2x192xf32, #tpu.memory_space<smem>>
    %572 = arith.index_cast %26 : i32 to index
    %c151 = arith.constant 151 : index
    %573 = memref.load %arg1[%572, %c151] : memref<2x192xf32, #tpu.memory_space<smem>>
    %574 = arith.index_cast %26 : i32 to index
    %c152 = arith.constant 152 : index
    %575 = memref.load %arg1[%574, %c152] : memref<2x192xf32, #tpu.memory_space<smem>>
    %576 = arith.index_cast %26 : i32 to index
    %c153 = arith.constant 153 : index
    %577 = memref.load %arg1[%576, %c153] : memref<2x192xf32, #tpu.memory_space<smem>>
    %578 = arith.index_cast %26 : i32 to index
    %c154 = arith.constant 154 : index
    %579 = memref.load %arg1[%578, %c154] : memref<2x192xf32, #tpu.memory_space<smem>>
    %580 = vector.broadcast %559 : f32 to vector<8x128xf32>
    %581 = arith.mulf %580, %16 : vector<8x128xf32>
    %582 = vector.broadcast %561 : f32 to vector<8x128xf32>
    %583 = arith.mulf %582, %22 : vector<8x128xf32>
    %584 = arith.addf %581, %583 : vector<8x128xf32>
    %585 = vector.broadcast %563 : f32 to vector<8x128xf32>
    %586 = arith.addf %584, %585 : vector<8x128xf32>
    %587 = vector.broadcast %565 : f32 to vector<8x128xf32>
    %588 = arith.mulf %587, %16 : vector<8x128xf32>
    %589 = vector.broadcast %567 : f32 to vector<8x128xf32>
    %590 = arith.mulf %589, %22 : vector<8x128xf32>
    %591 = arith.addf %588, %590 : vector<8x128xf32>
    %592 = vector.broadcast %569 : f32 to vector<8x128xf32>
    %593 = arith.addf %591, %592 : vector<8x128xf32>
    %594 = vector.broadcast %571 : f32 to vector<8x128xf32>
    %595 = arith.subf %594, %586 : vector<8x128xf32>
    %596 = arith.subf %595, %593 : vector<8x128xf32>
    %cst_34 = arith.constant 0.000000e+00 : f32
    %597 = vector.broadcast %cst_34 : f32 to vector<8x128xf32>
    %598 = arith.cmpf oge, %586, %597 : vector<8x128xf32>
    %cst_35 = arith.constant 0.000000e+00 : f32
    %599 = vector.broadcast %cst_35 : f32 to vector<8x128xf32>
    %600 = arith.cmpf oge, %593, %599 : vector<8x128xf32>
    %601 = arith.andi %598, %600 : vector<8x128xi1>
    %cst_36 = arith.constant 0.000000e+00 : f32
    %602 = vector.broadcast %cst_36 : f32 to vector<8x128xf32>
    %603 = arith.cmpf oge, %596, %602 : vector<8x128xf32>
    %604 = arith.andi %601, %603 : vector<8x128xi1>
    %605 = vector.broadcast %573 : f32 to vector<8x128xf32>
    %606 = arith.mulf %605, %16 : vector<8x128xf32>
    %607 = vector.broadcast %575 : f32 to vector<8x128xf32>
    %608 = arith.mulf %607, %22 : vector<8x128xf32>
    %609 = arith.addf %606, %608 : vector<8x128xf32>
    %610 = vector.broadcast %577 : f32 to vector<8x128xf32>
    %611 = arith.addf %609, %610 : vector<8x128xf32>
    %612 = arith.cmpf olt, %611, %555 : vector<8x128xf32>
    %613 = arith.andi %604, %612 : vector<8x128xi1>
    %614 = arith.select %613, %611, %555 : vector<8x128xi1>, vector<8x128xf32>
    %615 = vector.broadcast %579 : f32 to vector<8x128xf32>
    %616 = arith.select %613, %615, %557 : vector<8x128xi1>, vector<8x128xf32>
    %617 = arith.index_cast %26 : i32 to index
    %c160 = arith.constant 160 : index
    %618 = memref.load %arg1[%617, %c160] : memref<2x192xf32, #tpu.memory_space<smem>>
    %619 = arith.index_cast %26 : i32 to index
    %c161 = arith.constant 161 : index
    %620 = memref.load %arg1[%619, %c161] : memref<2x192xf32, #tpu.memory_space<smem>>
    %621 = arith.index_cast %26 : i32 to index
    %c162 = arith.constant 162 : index
    %622 = memref.load %arg1[%621, %c162] : memref<2x192xf32, #tpu.memory_space<smem>>
    %623 = arith.index_cast %26 : i32 to index
    %c163 = arith.constant 163 : index
    %624 = memref.load %arg1[%623, %c163] : memref<2x192xf32, #tpu.memory_space<smem>>
    %625 = arith.index_cast %26 : i32 to index
    %c164 = arith.constant 164 : index
    %626 = memref.load %arg1[%625, %c164] : memref<2x192xf32, #tpu.memory_space<smem>>
    %627 = arith.index_cast %26 : i32 to index
    %c165 = arith.constant 165 : index
    %628 = memref.load %arg1[%627, %c165] : memref<2x192xf32, #tpu.memory_space<smem>>
    %629 = arith.index_cast %26 : i32 to index
    %c166 = arith.constant 166 : index
    %630 = memref.load %arg1[%629, %c166] : memref<2x192xf32, #tpu.memory_space<smem>>
    %631 = arith.index_cast %26 : i32 to index
    %c167 = arith.constant 167 : index
    %632 = memref.load %arg1[%631, %c167] : memref<2x192xf32, #tpu.memory_space<smem>>
    %633 = arith.index_cast %26 : i32 to index
    %c168 = arith.constant 168 : index
    %634 = memref.load %arg1[%633, %c168] : memref<2x192xf32, #tpu.memory_space<smem>>
    %635 = arith.index_cast %26 : i32 to index
    %c169 = arith.constant 169 : index
    %636 = memref.load %arg1[%635, %c169] : memref<2x192xf32, #tpu.memory_space<smem>>
    %637 = arith.index_cast %26 : i32 to index
    %c170 = arith.constant 170 : index
    %638 = memref.load %arg1[%637, %c170] : memref<2x192xf32, #tpu.memory_space<smem>>
    %639 = vector.broadcast %618 : f32 to vector<8x128xf32>
    %640 = arith.mulf %639, %16 : vector<8x128xf32>
    %641 = vector.broadcast %620 : f32 to vector<8x128xf32>
    %642 = arith.mulf %641, %22 : vector<8x128xf32>
    %643 = arith.addf %640, %642 : vector<8x128xf32>
    %644 = vector.broadcast %622 : f32 to vector<8x128xf32>
    %645 = arith.addf %643, %644 : vector<8x128xf32>
    %646 = vector.broadcast %624 : f32 to vector<8x128xf32>
    %647 = arith.mulf %646, %16 : vector<8x128xf32>
    %648 = vector.broadcast %626 : f32 to vector<8x128xf32>
    %649 = arith.mulf %648, %22 : vector<8x128xf32>
    %650 = arith.addf %647, %649 : vector<8x128xf32>
    %651 = vector.broadcast %628 : f32 to vector<8x128xf32>
    %652 = arith.addf %650, %651 : vector<8x128xf32>
    %653 = vector.broadcast %630 : f32 to vector<8x128xf32>
    %654 = arith.subf %653, %645 : vector<8x128xf32>
    %655 = arith.subf %654, %652 : vector<8x128xf32>
    %cst_37 = arith.constant 0.000000e+00 : f32
    %656 = vector.broadcast %cst_37 : f32 to vector<8x128xf32>
    %657 = arith.cmpf oge, %645, %656 : vector<8x128xf32>
    %cst_38 = arith.constant 0.000000e+00 : f32
    %658 = vector.broadcast %cst_38 : f32 to vector<8x128xf32>
    %659 = arith.cmpf oge, %652, %658 : vector<8x128xf32>
    %660 = arith.andi %657, %659 : vector<8x128xi1>
    %cst_39 = arith.constant 0.000000e+00 : f32
    %661 = vector.broadcast %cst_39 : f32 to vector<8x128xf32>
    %662 = arith.cmpf oge, %655, %661 : vector<8x128xf32>
    %663 = arith.andi %660, %662 : vector<8x128xi1>
    %664 = vector.broadcast %632 : f32 to vector<8x128xf32>
    %665 = arith.mulf %664, %16 : vector<8x128xf32>
    %666 = vector.broadcast %634 : f32 to vector<8x128xf32>
    %667 = arith.mulf %666, %22 : vector<8x128xf32>
    %668 = arith.addf %665, %667 : vector<8x128xf32>
    %669 = vector.broadcast %636 : f32 to vector<8x128xf32>
    %670 = arith.addf %668, %669 : vector<8x128xf32>
    %671 = arith.cmpf olt, %670, %614 : vector<8x128xf32>
    %672 = arith.andi %663, %671 : vector<8x128xi1>
    %673 = arith.select %672, %670, %614 : vector<8x128xi1>, vector<8x128xf32>
    %674 = vector.broadcast %638 : f32 to vector<8x128xf32>
    %675 = arith.select %672, %674, %616 : vector<8x128xi1>, vector<8x128xf32>
    %676 = arith.index_cast %26 : i32 to index
    %c176 = arith.constant 176 : index
    %677 = memref.load %arg1[%676, %c176] : memref<2x192xf32, #tpu.memory_space<smem>>
    %678 = arith.index_cast %26 : i32 to index
    %c177 = arith.constant 177 : index
    %679 = memref.load %arg1[%678, %c177] : memref<2x192xf32, #tpu.memory_space<smem>>
    %680 = arith.index_cast %26 : i32 to index
    %c178 = arith.constant 178 : index
    %681 = memref.load %arg1[%680, %c178] : memref<2x192xf32, #tpu.memory_space<smem>>
    %682 = arith.index_cast %26 : i32 to index
    %c179 = arith.constant 179 : index
    %683 = memref.load %arg1[%682, %c179] : memref<2x192xf32, #tpu.memory_space<smem>>
    %684 = arith.index_cast %26 : i32 to index
    %c180 = arith.constant 180 : index
    %685 = memref.load %arg1[%684, %c180] : memref<2x192xf32, #tpu.memory_space<smem>>
    %686 = arith.index_cast %26 : i32 to index
    %c181 = arith.constant 181 : index
    %687 = memref.load %arg1[%686, %c181] : memref<2x192xf32, #tpu.memory_space<smem>>
    %688 = arith.index_cast %26 : i32 to index
    %c182 = arith.constant 182 : index
    %689 = memref.load %arg1[%688, %c182] : memref<2x192xf32, #tpu.memory_space<smem>>
    %690 = arith.index_cast %26 : i32 to index
    %c183 = arith.constant 183 : index
    %691 = memref.load %arg1[%690, %c183] : memref<2x192xf32, #tpu.memory_space<smem>>
    %692 = arith.index_cast %26 : i32 to index
    %c184 = arith.constant 184 : index
    %693 = memref.load %arg1[%692, %c184] : memref<2x192xf32, #tpu.memory_space<smem>>
    %694 = arith.index_cast %26 : i32 to index
    %c185 = arith.constant 185 : index
    %695 = memref.load %arg1[%694, %c185] : memref<2x192xf32, #tpu.memory_space<smem>>
    %696 = arith.index_cast %26 : i32 to index
    %c186 = arith.constant 186 : index
    %697 = memref.load %arg1[%696, %c186] : memref<2x192xf32, #tpu.memory_space<smem>>
    %698 = vector.broadcast %677 : f32 to vector<8x128xf32>
    %699 = arith.mulf %698, %16 : vector<8x128xf32>
    %700 = vector.broadcast %679 : f32 to vector<8x128xf32>
    %701 = arith.mulf %700, %22 : vector<8x128xf32>
    %702 = arith.addf %699, %701 : vector<8x128xf32>
    %703 = vector.broadcast %681 : f32 to vector<8x128xf32>
    %704 = arith.addf %702, %703 : vector<8x128xf32>
    %705 = vector.broadcast %683 : f32 to vector<8x128xf32>
    %706 = arith.mulf %705, %16 : vector<8x128xf32>
    %707 = vector.broadcast %685 : f32 to vector<8x128xf32>
    %708 = arith.mulf %707, %22 : vector<8x128xf32>
    %709 = arith.addf %706, %708 : vector<8x128xf32>
    %710 = vector.broadcast %687 : f32 to vector<8x128xf32>
    %711 = arith.addf %709, %710 : vector<8x128xf32>
    %712 = vector.broadcast %689 : f32 to vector<8x128xf32>
    %713 = arith.subf %712, %704 : vector<8x128xf32>
    %714 = arith.subf %713, %711 : vector<8x128xf32>
    %cst_40 = arith.constant 0.000000e+00 : f32
    %715 = vector.broadcast %cst_40 : f32 to vector<8x128xf32>
    %716 = arith.cmpf oge, %704, %715 : vector<8x128xf32>
    %cst_41 = arith.constant 0.000000e+00 : f32
    %717 = vector.broadcast %cst_41 : f32 to vector<8x128xf32>
    %718 = arith.cmpf oge, %711, %717 : vector<8x128xf32>
    %719 = arith.andi %716, %718 : vector<8x128xi1>
    %cst_42 = arith.constant 0.000000e+00 : f32
    %720 = vector.broadcast %cst_42 : f32 to vector<8x128xf32>
    %721 = arith.cmpf oge, %714, %720 : vector<8x128xf32>
    %722 = arith.andi %719, %721 : vector<8x128xi1>
    %723 = vector.broadcast %691 : f32 to vector<8x128xf32>
    %724 = arith.mulf %723, %16 : vector<8x128xf32>
    %725 = vector.broadcast %693 : f32 to vector<8x128xf32>
    %726 = arith.mulf %725, %22 : vector<8x128xf32>
    %727 = arith.addf %724, %726 : vector<8x128xf32>
    %728 = vector.broadcast %695 : f32 to vector<8x128xf32>
    %729 = arith.addf %727, %728 : vector<8x128xf32>
    %730 = arith.cmpf olt, %729, %673 : vector<8x128xf32>
    %731 = arith.andi %722, %730 : vector<8x128xi1>
    %732 = arith.select %731, %729, %673 : vector<8x128xi1>, vector<8x128xf32>
    %733 = vector.broadcast %697 : f32 to vector<8x128xf32>
    %734 = arith.select %731, %733, %675 : vector<8x128xi1>, vector<8x128xf32>
    %cst_43 = arith.constant 1.000000e+30 : f32
    %735 = vector.broadcast %cst_43 : f32 to vector<8x128xf32>
    %736 = arith.cmpf olt, %732, %735 : vector<8x128xf32>
    %cst_44 = arith.constant 1.52587891E-5 : f32
    %737 = vector.broadcast %cst_44 : f32 to vector<8x128xf32>
    %738 = arith.mulf %734, %737 : vector<8x128xf32>
    %739 = math.floor %738 : vector<8x128xf32>
    %cst_45 = arith.constant 6.553600e+04 : f32
    %740 = vector.broadcast %cst_45 : f32 to vector<8x128xf32>
    %741 = arith.mulf %739, %740 : vector<8x128xf32>
    %742 = arith.subf %734, %741 : vector<8x128xf32>
    %cst_46 = arith.constant 3.906250e-03 : f32
    %743 = vector.broadcast %cst_46 : f32 to vector<8x128xf32>
    %744 = arith.mulf %742, %743 : vector<8x128xf32>
    %745 = math.floor %744 : vector<8x128xf32>
    %cst_47 = arith.constant 2.560000e+02 : f32
    %746 = vector.broadcast %cst_47 : f32 to vector<8x128xf32>
    %747 = arith.mulf %745, %746 : vector<8x128xf32>
    %748 = arith.subf %742, %747 : vector<8x128xf32>
    %cst_48 = arith.constant 0.00392156886 : f32
    %749 = vector.broadcast %cst_48 : f32 to vector<8x128xf32>
    %750 = arith.mulf %739, %749 : vector<8x128xf32>
    %c0_49 = arith.constant 0 : index
    %c0_50 = arith.constant 0 : index
    %c0_51 = arith.constant 0 : index
    %c0_52 = arith.constant 0 : index
    %751 = vector.load %arg2[%c0_49, %c0_50, %c0_51, %c0_52] : memref<1x5x8x128xf32, #tpu.memory_space<vmem>>, vector<1x1x8x128xf32>
    %752 = vector.shape_cast %751 : vector<1x1x8x128xf32> to vector<8x128xf32>
    %753 = vector.shape_cast %750 : vector<8x128xf32> to vector<1x1x8x128xf32>
    tpu.vector_store %arg2[%c0_49, %c0_50, %c0_51, %c0_52], %753 {strides = array<i32>} : memref<1x5x8x128xf32, #tpu.memory_space<vmem>>, vector<1x1x8x128xf32>,
    %cst_53 = arith.constant 0.00392156886 : f32
    %754 = vector.broadcast %cst_53 : f32 to vector<8x128xf32>
    %755 = arith.mulf %745, %754 : vector<8x128xf32>
    %c0_54 = arith.constant 0 : index
    %c1_55 = arith.constant 1 : index
    %c0_56 = arith.constant 0 : index
    %c0_57 = arith.constant 0 : index
    %756 = vector.load %arg2[%c0_54, %c1_55, %c0_56, %c0_57] : memref<1x5x8x128xf32, #tpu.memory_space<vmem>>, vector<1x1x8x128xf32>
    %757 = vector.shape_cast %756 : vector<1x1x8x128xf32> to vector<8x128xf32>
    %758 = vector.shape_cast %755 : vector<8x128xf32> to vector<1x1x8x128xf32>
    tpu.vector_store %arg2[%c0_54, %c1_55, %c0_56, %c0_57], %758 {strides = array<i32>} : memref<1x5x8x128xf32, #tpu.memory_space<vmem>>, vector<1x1x8x128xf32>,
    %cst_58 = arith.constant 0.00392156886 : f32
    %759 = vector.broadcast %cst_58 : f32 to vector<8x128xf32>
    %760 = arith.mulf %748, %759 : vector<8x128xf32>
    %c0_59 = arith.constant 0 : index
    %c2_60 = arith.constant 2 : index
    %c0_61 = arith.constant 0 : index
    %c0_62 = arith.constant 0 : index
    %761 = vector.load %arg2[%c0_59, %c2_60, %c0_61, %c0_62] : memref<1x5x8x128xf32, #tpu.memory_space<vmem>>, vector<1x1x8x128xf32>
    %762 = vector.shape_cast %761 : vector<1x1x8x128xf32> to vector<8x128xf32>
    %763 = vector.shape_cast %760 : vector<8x128xf32> to vector<1x1x8x128xf32>
    tpu.vector_store %arg2[%c0_59, %c2_60, %c0_61, %c0_62], %763 {strides = array<i32>} : memref<1x5x8x128xf32, #tpu.memory_space<vmem>>, vector<1x1x8x128xf32>,
    %764 = arith.extui %736 : vector<8x128xi1> to vector<8x128xi32>
    %765 = arith.sitofp %764 : vector<8x128xi32> to vector<8x128xf32>
    %c0_63 = arith.constant 0 : index
    %c3_64 = arith.constant 3 : index
    %c0_65 = arith.constant 0 : index
    %c0_66 = arith.constant 0 : index
    %766 = vector.load %arg2[%c0_63, %c3_64, %c0_65, %c0_66] : memref<1x5x8x128xf32, #tpu.memory_space<vmem>>, vector<1x1x8x128xf32>
    %767 = vector.shape_cast %766 : vector<1x1x8x128xf32> to vector<8x128xf32>
    %768 = vector.shape_cast %765 : vector<8x128xf32> to vector<1x1x8x128xf32>
    tpu.vector_store %arg2[%c0_63, %c3_64, %c0_65, %c0_66], %768 {strides = array<i32>} : memref<1x5x8x128xf32, #tpu.memory_space<vmem>>, vector<1x1x8x128xf32>,
    %cst_67 = arith.constant -1.000000e+00 : f32
    %769 = vector.broadcast %cst_67 : f32 to vector<8x128xf32>
    %770 = arith.select %736, %732, %769 : vector<8x128xi1>, vector<8x128xf32>
    %c0_68 = arith.constant 0 : index
    %c4_69 = arith.constant 4 : index
    %c0_70 = arith.constant 0 : index
    %c0_71 = arith.constant 0 : index
    %771 = vector.load %arg2[%c0_68, %c4_69, %c0_70, %c0_71] : memref<1x5x8x128xf32, #tpu.memory_space<vmem>>, vector<1x1x8x128xf32>
    %772 = vector.shape_cast %771 : vector<1x1x8x128xf32> to vector<8x128xf32>
    %773 = vector.shape_cast %770 : vector<8x128xf32> to vector<1x1x8x128xf32>
    tpu.vector_store %arg2[%c0_68, %c4_69, %c0_70, %c0_71], %773 {strides = array<i32>} : memref<1x5x8x128xf32, #tpu.memory_space<vmem>>, vector<1x1x8x128xf32>,
    return
  }
  func.func @transform_0(%arg0: i32) -> (i32, i32) {
    %c0_i32 = arith.constant 0 : i32
    %c0_i32_0 = arith.constant 0 : i32
    %c0_i32_1 = arith.constant 0 : i32
    return %c0_i32, %c0_i32_0 : i32, i32
  }
  func.func @transform_1(%arg0: i32) -> (i32, i32, i32, i32) {
    %c0_i32 = arith.constant 0 : i32
    %c0_i32_0 = arith.constant 0 : i32
    %c0_i32_1 = arith.constant 0 : i32
    %c0_i32_2 = arith.constant 0 : i32
    return %arg0, %c0_i32, %c0_i32_0, %c0_i32_1 : i32, i32, i32, i32
  }
}

</mosaic_0001>

<bundles_post_ra>
// kernel: tpu_custom_call.1
= control target key start
LH: loop header
LB: loop body
LE: loop exit
PB: predicated region body
PF: predicated region fallthrough
CT: control target
= control target key end

     0   :  { %s2459_s0 = inlined_call_operand.hbm [shape: f32[2,192], index: 0, kind: input, shape index: {}]   ;;  %s2460_s1 = inlined_call_operand.hbm [shape: f32[2,5,8,128], index: 1, kind: output, shape index: {}]  }
   0x1   :  { %2517 = sst [smem:[#allocation33_spill]] %s2459_s0 }
   0x2   :  { %2518 = sst [smem:[#allocation34_spill]] %s2460_s1 }
   0x3   :  { %6 = vsyncpa [#allocation4], 0 }
   0x4   :  { %7 = vsyncpa [#allocation3], 0 }
   0x5   :  { %9 = vsyncpa [#allocation3 + $0x1], 0  ;;  %s1160_s6 = smov 0   ;;  %s1162_s7 = smov 0  }
   0x6   :  { %s1164_s8 = smov 0   ;;  %s1166_s9 = smov 0  }
   0x7 LB: > { %2519 = sst [smem:[#allocation8_spill]] %s1131_s6  ;;  %s1181_s10 = sadd.s32 4294967295, %s1143_s9   ;;  %s1143_s9 = sphi %s1166_s9, %s2685_s9   ;;  %s1139_s8 = sphi %s1164_s8, %s2688_s8   ;;  %s1135_s7 = sphi %s1162_s7, %s2687_s7   ;;  %s1131_s6 = sphi %s1160_s6, %s2686_s6  }
   0x8   : > { %2520 = sst [smem:[#allocation9_spill]] %s1135_s7  ;;  %s991_s11 = sadd.s32 4294967294, %s1143_s9  }
   0x9   : > { %2521 = sst [smem:[#allocation10_spill]] %s1139_s8  ;;  %s1185_s12 = sadd.s32 1, %s1143_s9  }
   0xa   : > { %2522 = sst [smem:[#allocation11_spill]] %s1143_s9  ;;  %s43_s13 = sadd.s32 1, %s1139_s8 }
   0xb   : > { %2523 = sst [smem:[#allocation12_spill]] %s1181_s10  ;;  %s40_s14 = ssub.s32 %s1143_s9, %s1185_s12 }
   0xc   : > { %2524 = sst [smem:[#allocation13_spill]] %s1185_s12  ;;  %p53_p0 = scmp.ne.s32.totalorder %s1139_s8, %s1135_s7 }
   0xd   : > { %p41_p1 = scmp.eq.s32.totalorder %s40_s14, 0  ;;  %p54_p2 = scmp.eq.s32.totalorder %s1181_s10, 1 }
   0xe   : > { %p59_p3 = scmp.ne.s32.totalorder %s1135_s7, %s1131_s6  ;;  %p60_p4 = scmp.eq.s32.totalorder %s991_s11, 1 }
   0xf   : > { %s1196_s15 = scalar_select %p41_p1, %s1139_s8, %s43_s13  }
  0x10   : > { %p1198_p5 = por %p54_p2, %p53_p0  ;;  %p1202_p6 = por %p60_p4, %p59_p3 }
  0x11   : > { %2525 = sst [smem:[#allocation14_spill]] %s1196_s15  ;;  %p992_p7 = scmp.ge.s32.totalorder %s1143_s9, 1 }
  0x12   : > { %s2526_s16 = scalar_select %p1198_p5, 1, 0 }
  0x13   : > { %s2528_s17 = scalar_select %p1202_p6, 1, 0 }
  0x14   : > { %2527 = sst [smem:[#allocation15_spill]] %s2526_s16  ;;  %p67_p8 = scmp.lt.s32.totalorder %s1143_s9, 3 }
  0x15   : > { %2529 = sst [smem:[#allocation16_spill]] %s2528_s17  ;;  %p1029_p10 = scmp.eq.s32.totalorder %s1181_s10, 0 }
  0x16   : > { %p68_p9 = pnand %p992_p7, %p67_p8  ;;  %s1145_s18 = smov [#allocation2]  }
  0x17   : > { %s2530_s0 = sld [smem:[#allocation33_spill]] }
  0x18   : > { %p1021_p11 = pneg %p68_p9 }
  0x19   : > { %91 = sbr.rel (%p68_p9) target bundleno = 296 (0x128), region = 24 }
  0x1a   : > { %p1022_p12 = pnand %p1029_p10, %p1021_p11 }
  0x1d   : > { %1024 = dma.hbm_to_smem (!%p1022_p12), %s2530_s0, 64, %s1145_s18, [#allocation4]  }
  0x1e   : > { %1122 = dma.done.wait (%p1029_p10), [#allocation4], 64  }
  0x1f   : > { %1124 = vsyncadd (%p1029_p10), [#allocation4], 4294967232 }
  0x20   : > { %97 = sfence }
  0x21   : > { %s123_s21 = sshra.s32 %s1181_s10, 1  ;;  %s128_s23 = sand.u32 1, %s1181_s10  ;;  %v107_v0 = vlaneseq }
  0x22   : > { %s1213_s22 = sshll.u32 %s123_s21, 9  ;;  %s1216_s24 = sshll.u32 %s128_s23, 7 }
  0x23   : > { %s1219_s25 = sadd.s32 256, %s1213_s22  ;;  %s130_s26 = sadd.s32 %s1213_s22, %s1216_s24  ;;  %v108_v1 = vshrl.u32 %v107_v0, 7  ;;  %v110_v2 = vand.u32 127, %v107_v0 }
  0x24   : > { %2531 = sst [smem:[#allocation17_spill]] %s1219_s25  ;;  %s2467_s27 = sadd.s32 1, %s1216_s24 }
  0x25   : > { %s1224_s28 = sld [smem:[#allocation2 + %s130_s26]]  ;;  %s133_s29 = sadd.s32 %s1213_s22, %s2467_s27  ;;  %v111_v3 = vmul.u32 128, %v108_v1 }
  0x26   : > { %s1229_s30 = sld [smem:[#allocation2 + %s133_s29]]  ;;  %s2464_s2 = sadd.s32 2, %s1216_s24 }
  0x27   : > { %s136_s3 = sadd.s32 %s1213_s22, %s2464_s2  ;;  %s2463_s4 = sadd.s32 3, %s1216_s24  ;;  %v112_v4 = vadd.s32 %v111_v3, %v110_v2 }
  0x28   : > { %s1236_s5 = sld [smem:[#allocation2 + %s136_s3]]  ;;  %s139_s11 = sadd.s32 %s1213_s22, %s2463_s4 }
  0x29   : > { %s1241_s13 = sld [smem:[#allocation2 + %s139_s11]]  ;;  %s2461_s14 = sadd.s32 4, %s1216_s24  ;;  %v113_v5 = vand.u32 31, %v112_v4  ;;  %v115_v6 = vshra.s32 %v112_v4, 5 }
  0x2a   : > { %s142_s18 = sadd.s32 %s1213_s22, %s2461_s14  ;;  %s2462_s19 = sadd.s32 5, %s1216_s24 }
  0x2b   : > { %s1248_s20 = sld [smem:[#allocation2 + %s142_s18]]  ;;  %s145_s21 = sadd.s32 %s1213_s22, %s2462_s19  ;;  %v114_v7 = vcvt.s32.f32 %v113_v5  ;;  %v116_v8 = vcvt.s32.f32 %v115_v6  ;;  %v162_v15 = vstv %s1224_s28 }
  0x2c   : > { %s1253_s23 = sld [smem:[#allocation2 + %s145_s21]]  ;;  %s2465_s26 = sadd.s32 6, %s1216_s24  ;;  %v164_v16 = vstv %s1229_s30 }
  0x2d   : > { %s148_s29 = sadd.s32 %s1213_s22, %s2465_s26  ;;  %s2466_s3 = sadd.s32 7, %s1216_s24  ;;  %v117_v9 = vadd.f32 0.5, %v114_v7  ;;  %v120_v10 = vadd.f32 0.5, %v116_v8 }
  0x2e   : > { %s1260_s11 = sld [smem:[#allocation2 + %s148_s29]]  ;;  %s151_s18 = sadd.s32 %s1213_s22, %s2466_s3  ;;  %v167_v24 = vstv %s1236_s5 }
  0x2f   : > { %s1265_s14 = sld [smem:[#allocation2 + %s151_s18]]  ;;  %s2468_s19 = sadd.s32 8, %s1216_s24  ;;  %v118_v11 = vmul.f32 0.0625, %v117_v9  ;;  %v121_v12 = vmul.f32 0.0625, %v120_v10  ;;  %v169_v19 = vstv %s1241_s13 }
  0x30   : > { %s154_s21 = sadd.s32 %s1213_s22, %s2468_s19  ;;  %s2469_s4 = sadd.s32 9, %s1216_s24 }
  0x31   : > { %s1272_s2 = sld [smem:[#allocation2 + %s154_s21]]  ;;  %s157_s26 = sadd.s32 %s1213_s22, %s2469_s4  ;;  %v1424_v13 = vadd.f32 -1.0, %v118_v11  ;;  %v1426_v14 = vsub.f32 1.0, %v121_v12  ;;  %v171_v20 = vstv %s1248_s20 }
  0x32   : > { %s1277_s29 = sld [smem:[#allocation2 + %s157_s26]]  ;;  %s2470_s3 = sadd.s32 10, %s1216_s24  ;;  %v174_v31 = vstv %s1253_s23 }
  0x33   : > { %s160_s18 = sadd.s32 %s1213_s22, %s2470_s3  ;;  %s2472_s27 = sadd.s32 16, %s1216_s24  ;;  %v163_v17 = vmul.f32 %v1424_v13, %v162_v15  ;;  %v165_v18 = vmul.f32 %v164_v16, %v1426_v14  ;;  %v170_v22 = vmul.f32 %v1424_v13, %v169_v19  ;;  %v172_v23 = vmul.f32 %v171_v20, %v1426_v14 }
  0x34   : > { %s1284_s19 = sld [smem:[#allocation2 + %s160_s18]]  ;;  %s197_s0 = sadd.s32 %s1213_s22, %s2472_s27  ;;  %v176_v32 = vstv %s1260_s11 }
  0x35   : > { %s1289_s21 = sld [smem:[#allocation2 + %s197_s0]]  ;;  %s2476_s4 = sadd.s32 17, %s1216_s24  ;;  %v166_v21 = vadd.f32 %v165_v18, %v163_v17  ;;  %v184_v25 = vstv %s1265_s14  ;;  %v173_v28 = vadd.f32 %v172_v23, %v170_v22 }
  0x36   : > { %s200_s26 = sadd.s32 %s1213_s22, %s2476_s4  ;;  %s2477_s15 = sadd.s32 18, %s1216_s24  ;;  %v185_v33 = vmul.f32 %v1424_v13, %v184_v25 }
  0x37   : > { %s1296_s3 = sld [smem:[#allocation2 + %s200_s26]]  ;;  %s203_s18 = sadd.s32 %s1213_s22, %s2477_s15  ;;  %v186_v26 = vstv %s1272_s2  ;;  %v168_v27 = vadd.f32 %v167_v24, %v166_v21  ;;  %v175_v37 = vadd.f32 %v174_v31, %v173_v28 }
  0x38   : > { %s1301_s8 = sld [smem:[#allocation2 + %s203_s18]]  ;;  %s2479_s27 = sadd.s32 19, %s1216_s24  ;;  %v187_v34 = vmul.f32 %v186_v26, %v1426_v14  ;;  %v189_v42 = vstv %s1277_s29 }
  0x39   : > { %s206_s0 = sadd.s32 %s1213_s22, %s2479_s27  ;;  %s2481_s12 = sadd.s32 20, %s1216_s24  ;;  %v177_v38 = vsub.f32 %v176_v32, %v168_v27  ;;  %vm179_vm0 = vcmp.ge.f32.partialorder %v168_v27, 0.0  ;;  %vm180_vm1 = vcmp.ge.f32.partialorder %v175_v37, 0.0 }
  0x3a   : > { %2532 = sst [smem:[#allocation18_spill]] %s1284_s19  ;;  %s209_s4 = sadd.s32 %s1213_s22, %s2481_s12  ;;  %v188_v41 = vadd.f32 %v187_v34, %v185_v33  ;;  %vm1542_vm2 = vmand %vm179_vm0, %vm180_vm1 }
  0x3b   : > { %s1308_s17 = sld [smem:[#allocation2 + %s206_s0]]  ;;  %s2482_s18 = sadd.s32 21, %s1216_s24  ;;  %v229_v29 = vstv %s1289_s21  ;;  %v178_v46 = vsub.f32 %v177_v38, %v175_v37 }
  0x3c   : > { %s1313_s26 = sld [smem:[#allocation2 + %s209_s4]]  ;;  %s212_s15 = sadd.s32 %s1213_s22, %s2482_s18  ;;  %v230_v35 = vmul.f32 %v1424_v13, %v229_v29  ;;  %v190_v48 = vadd.f32 %v189_v42, %v188_v41 }
  0x3d   : > { %s2486_s6 = sadd.s32 22, %s1216_s24  ;;  %s1320_s27 = sld [smem:[#allocation2 + %s212_s15]]  ;;  %v231_v30 = vstv %s1296_s3  ;;  %vm1546_vm3 = vcmp.ge.f32.partialorder %v178_v46, 0.0 }
  0x3e   : > { %s215_s0 = sadd.s32 %s1213_s22, %s2486_s6  ;;  %s2488_s12 = sadd.s32 23, %s1216_s24  ;;  %v232_v36 = vmul.f32 %v231_v30, %v1426_v14  ;;  %v234_v47 = vstv %s1301_s8  ;;  %vm191_vm4 = vcmp.lt.f32.partialorder %v190_v48, 1e+30  ;;  %vm183_vm5 = vmand %vm1542_vm2, %vm1546_vm3 }
  0x3f   : > { %s1325_s9 = sld [smem:[#allocation2 + %s215_s0]]  ;;  %s218_s4 = sadd.s32 %s1213_s22, %s2488_s12  ;;  %vm1579_vm6 = vmand %vm183_vm5, %vm191_vm4 }
  0x40   : > { %s2491_s18 = sadd.s32 24, %s1216_s24  ;;  %s1332_s15 = sld [smem:[#allocation2 + %s218_s4]]  ;;  %v233_v43 = vadd.f32 %v232_v36, %v230_v35  ;;  %v193_v11 = vsel %vm1579_vm6, %v190_v48, 1e+30 }
  0x41   : > { %s221_s1 = sadd.s32 %s1213_s22, %s2491_s18  ;;  %s2492_s0 = sadd.s32 25, %s1216_s24  ;;  %v236_v39 = vstv %s1308_s17 }
  0x42   : > { %s1337_s16 = sld [smem:[#allocation2 + %s221_s1]]  ;;  %s224_s6 = sadd.s32 %s1213_s22, %s2492_s0  ;;  %v238_v40 = vstv %s1313_s26  ;;  %v237_v44 = vmul.f32 %v1424_v13, %v236_v39  ;;  %v235_v51 = vadd.f32 %v234_v47, %v233_v43 }
  0x43   : > { %2533 = sst [smem:[#allocation19_spill]] %s1320_s27  ;;  %s2495_s10 = sadd.s32 26, %s1216_s24  ;;  %v239_v45 = vmul.f32 %v238_v40, %v1426_v14 }
  0x44   : > { %s1344_s12 = sld [smem:[#allocation2 + %s224_s6]]  ;;  %s227_s4 = sadd.s32 %s1213_s22, %s2495_s10  ;;  %vm246_vm7 = vcmp.ge.f32.partialorder %v235_v51, 0.0 }
  0x45   : > { %2534 = sst [smem:[#allocation20_spill]] %s1325_s9  ;;  %s2494_s1 = sadd.s32 32, %s1216_s24  ;;  %v240_v52 = vadd.f32 %v239_v45, %v237_v44 }
  0x46   : > { %s1349_s7 = sld [smem:[#allocation2 + %s227_s4]]  ;;  %s264_s18 = sadd.s32 %s1213_s22, %s2494_s1  ;;  %v251_v49 = vstv %s1332_s15 }
  0x47   : > { %s2496_s19 = sadd.s32 33, %s1216_s24  ;;  %s1356_s0 = sld [smem:[#allocation2 + %s264_s18]]  ;;  %v252_v59 = vmul.f32 %v1424_v13, %v251_v49 }
  0x48   : > { %s267_s25 = sadd.s32 %s1213_s22, %s2496_s19  ;;  %s2498_s4 = sadd.s32 34, %s1216_s24  ;;  %v253_v50 = vstv %s1337_s16 }
  0x49   : > { %s1361_s6 = sld [smem:[#allocation2 + %s267_s25]]  ;;  %s270_s1 = sadd.s32 %s1213_s22, %s2498_s4  ;;  %v254_v60 = vmul.f32 %v253_v50, %v1426_v14 }
  0x4a   : > { %2535 = sst [smem:[#allocation21_spill]] %s1344_s12  ;;  %s2497_s10 = sadd.s32 35, %s1216_s24 }
  0x4b   : > { %s273_s18 = sadd.s32 %s1213_s22, %s2497_s10  ;;  %s2499_s12 = sadd.s32 36, %s1216_s24  ;;  %v255_v3 = vadd.f32 %v254_v60, %v252_v59 }
  0x4c   : > { %2536 = sst [smem:[#allocation22_spill]] %s1349_s7  ;;  %s276_s25 = sadd.s32 %s1213_s22, %s2499_s12 }
  0x4d   : > { %s1368_s7 = sld [smem:[#allocation2 + %s270_s1]]  ;;  %s2500_s9 = sadd.s32 37, %s1216_s24  ;;  %v296_v53 = vstv %s1356_s0 }
  0x4e   : > { %s1373_s19 = sld [smem:[#allocation2 + %s273_s18]]  ;;  %s279_s10 = sadd.s32 %s1213_s22, %s2500_s9  ;;  %v297_v61 = vmul.f32 %v1424_v13, %v296_v53 }
  0x4f   : > { %s1380_s1 = sld [smem:[#allocation2 + %s276_s25]]  ;;  %s2501_s18 = sadd.s32 38, %s1216_s24  ;;  %v298_v54 = vstv %s1361_s6 }
  0x50   : > { %s1385_s4 = sld [smem:[#allocation2 + %s279_s10]]  ;;  %s2502_s10 = sadd.s32 40, %s1216_s24  ;;  %v299_v62 = vmul.f32 %v298_v54, %v1426_v14 }
  0x51   : > { %s2513_s20 = sadd.s32 55, %s1216_s24  ;;  %s397_s3 = sadd.s32 64, %s1216_s24 }
  0x52   : > { %s398_s23 = sadd.s32 %s1213_s22, %s397_s3  ;;  %s400_s11 = sadd.s32 65, %s1216_s24  ;;  %v300_v6 = vadd.f32 %v299_v62, %v297_v61 }
  0x53   : > { %2537 = sst [smem:[#allocation23_spill]] %s1368_s7  ;;  %s282_s7 = sadd.s32 %s1213_s22, %s2501_s18 }
  0x54   : > { %2538 = sst [smem:[#allocation24_spill]] %s1373_s19  ;;  %s2503_s19 = sadd.s32 39, %s1216_s24 }
  0x55   : > { %2539 = sst [smem:[#allocation25_spill]] %s1380_s1  ;;  %s285_s25 = sadd.s32 %s1213_s22, %s2503_s19 }
  0x56   : > { %2540 = sst [smem:[#allocation26_spill]] %s1385_s4  ;;  %s288_s4 = sadd.s32 %s1213_s22, %s2502_s10 }
  0x57   : > { %s1392_s12 = sld [smem:[#allocation2 + %s282_s7]]  ;;  %s2504_s18 = sadd.s32 41, %s1216_s24 }
  0x58   : > { %s1397_s9 = sld [smem:[#allocation2 + %s285_s25]]  ;;  %s291_s27 = sadd.s32 %s1213_s22, %s2504_s18 }
  0x59   : > { %s1404_s1 = sld [smem:[#allocation2 + %s288_s4]]  ;;  %s2505_s25 = sadd.s32 42, %s1216_s24 }
  0x5a   : > { %s1409_s7 = sld [smem:[#allocation2 + %s291_s27]]  ;;  %s294_s10 = sadd.s32 %s1213_s22, %s2505_s25 }
  0x5b   : > { %s2506_s19 = sadd.s32 48, %s1216_s24  ;;  %s1416_s4 = sld [smem:[#allocation2 + %s294_s10]] }
  0x5c   : > { %s2508_s25 = sadd.s32 50, %s1216_s24  ;;  %s2547_s29 = sld [smem:[#allocation19_spill]] }
  0x5d   : > { %2541 = sst [smem:[#allocation27_spill]] %s1392_s12  ;;  %s331_s12 = sadd.s32 %s1213_s22, %s2506_s19 }
  0x5e   : > { %s1421_s18 = sld [smem:[#allocation2 + %s331_s12]]  ;;  %s337_s10 = sadd.s32 %s1213_s22, %s2508_s25  ;;  %v318_v15 = vstv %s1397_s9 }
  0x5f   : > { %2542 = sst [smem:[#allocation28_spill]] %s1404_s1  ;;  %s2509_s1 = sadd.s32 49, %s1216_s24  ;;  %v319_v25 = vmul.f32 %v1424_v13, %v318_v15 }
  0x60   : > { %2543 = sst [smem:[#allocation29_spill]] %s1409_s7  ;;  %s334_s27 = sadd.s32 %s1213_s22, %s2509_s1 }
  0x61   : > { %2544 = sst [smem:[#allocation30_spill]] %s1416_s4  ;;  %s2507_s4 = sadd.s32 51, %s1216_s24 }
  0x62   : > { %s1434_s12 = sld [smem:[#allocation2 + %s334_s27]]  ;;  %s340_s7 = sadd.s32 %s1213_s22, %s2507_s4  ;;  %v241_v57 = vstv %s2547_s29 }
  0x63   : > { %s1439_s19 = sld [smem:[#allocation2 + %s337_s10]]  ;;  %s2511_s10 = sadd.s32 53, %s1216_s24  ;;  %v242_v63 = vadd.f32 %v241_v57, %v240_v52 }
  0x64   : > { %2545 = sst [smem:[#allocation31_spill]] %s1421_s18  ;;  %s2512_s18 = sadd.s32 52, %s1216_s24 }
  0x65   : > { %s1448_s28 = sld [smem:[#allocation2 + %s340_s7]]  ;;  %s343_s30 = sadd.s32 %s1213_s22, %s2512_s18  ;;  %vm247_vm8 = vcmp.ge.f32.partialorder %v242_v63, 0.0 }
  0x66   : > { %s1455_s27 = sld [smem:[#allocation2 + %s343_s30]]  ;;  %s346_s4 = sadd.s32 %s1213_s22, %s2511_s10  ;;  %vm1608_vm9 = vmand %vm246_vm7, %vm247_vm8 }
  0x67   : > { %s2510_s25 = sadd.s32 54, %s1216_s24  ;;  %s1462_s7 = sld [smem:[#allocation2 + %s346_s4]] }
  0x68   : > { %s349_s1 = sadd.s32 %s1213_s22, %s2510_s25  ;;  %s352_s4 = sadd.s32 %s1213_s22, %s2513_s20  ;;  %v365_v20 = vstv %s1434_s12 }
  0x69   : > { %s1469_s13 = sld [smem:[#allocation2 + %s349_s1]]  ;;  %s2516_s30 = sadd.s32 56, %s1216_s24  ;;  %v366_v28 = vmul.f32 %v365_v20, %v1426_v14  ;;  %v368_v40 = vstv %s1439_s19 }
  0x6a   : > { %s1477_s25 = sld [smem:[#allocation2 + %s352_s4]]  ;;  %s355_s10 = sadd.s32 %s1213_s22, %s2516_s30 }
  0x6b   : > { %s1484_s18 = sld [smem:[#allocation2 + %s355_s10]]  ;;  %s2515_s1 = sadd.s32 57, %s1216_s24  ;;  %v370_v31 = vstv %s1448_s28 }
  0x6c   : > { %s358_s5 = sadd.s32 %s1213_s22, %s2515_s1  ;;  %s2514_s20 = sadd.s32 58, %s1216_s24  ;;  %v372_v32 = vstv %s1455_s27  ;;  %v371_v37 = vmul.f32 %v1424_v13, %v370_v31 }
  0x6d   : > { %s1495_s14 = sld [smem:[#allocation2 + %s358_s5]]  ;;  %s361_s2 = sadd.s32 %s1213_s22, %s2514_s20  ;;  %v373_v38 = vmul.f32 %v372_v32, %v1426_v14 }
  0x6e   : > { %s1502_s21 = sld [smem:[#allocation2 + %s361_s2]]  ;;  %s401_s4 = sadd.s32 %s1213_s22, %s400_s11 }
  0x6f   : > { %s1511_s10 = sld [smem:[#allocation2 + %s398_s23]]  ;;  %s403_s2 = sadd.s32 66, %s1216_s24  ;;  %v374_v46 = vadd.f32 %v373_v38, %v371_v37  ;;  %v377_v52 = vstv %s1469_s13 }
  0x70   : > { %s1514_s5 = sld [smem:[#allocation2 + %s401_s4]]  ;;  %s404_s20 = sadd.s32 %s1213_s22, %s403_s2  ;;  %v385_v43 = vstv %s1477_s25 }
  0x71   : > { %s406_s1 = sadd.s32 67, %s1216_s24  ;;  %s1522_s17 = sld [smem:[#allocation2 + %s404_s20]]  ;;  %v387_v44 = vstv %s1484_s18  ;;  %v386_v53 = vmul.f32 %v1424_v13, %v385_v43 }
  0x72   : > { %s407_s26 = sadd.s32 %s1213_s22, %s406_s1  ;;  %s409_s23 = sadd.s32 68, %s1216_s24  ;;  %v388_v54 = vmul.f32 %v387_v44, %v1426_v14 }
  0x73   : > { %s1526_s3 = sld [smem:[#allocation2 + %s407_s26]]  ;;  %s410_s11 = sadd.s32 %s1213_s22, %s409_s23 }
  0x74   : > { %2546 = sst [smem:[#allocation32_spill]] %s1502_s21  ;;  %s412_s2 = sadd.s32 69, %s1216_s24  ;;  %v389_v61 = vadd.f32 %v388_v54, %v386_v53 }
  0x75   : > { %s2548_s4 = sld [smem:[#allocation20_spill]]  ;;  %s413_s1 = sadd.s32 %s1213_s22, %s412_s2  ;;  %v430_v47 = vstv %s1511_s10 }
  0x76   : > { %s1533_s20 = sld [smem:[#allocation2 + %s410_s11]]  ;;  %s415_s26 = sadd.s32 70, %s1216_s24  ;;  %v432_v48 = vstv %s1514_s5  ;;  %v431_v55 = vmul.f32 %v1424_v13, %v430_v47 }
  0x77   : > { %s1538_s8 = sld [smem:[#allocation2 + %s413_s1]]  ;;  %s416_s23 = sadd.s32 %s1213_s22, %s415_s26  ;;  %v433_v56 = vmul.f32 %v432_v48, %v1426_v14 }
  0x78   : > { %s2554_s16 = sld [smem:[#allocation24_spill]]  ;;  %s418_s0 = sadd.s32 71, %s1216_s24 }
  0x79   : > { %s2555_s15 = sld [smem:[#allocation25_spill]]  ;;  %s419_s11 = sadd.s32 %s1213_s22, %s418_s0  ;;  %v437_v59 = vstv %s1526_s3 }
  0x7a   : > { %s1556_s6 = sld [smem:[#allocation2 + %s416_s23]]  ;;  %s421_s2 = sadd.s32 72, %s1216_s24 }
  0x7b   : > { %v243_v58 = vstv %s2548_s4  ;;  %s2557_s29 = sld [smem:[#allocation21_spill]]  ;;  %s422_s26 = sadd.s32 %s1213_s22, %s421_s2 }
  0x7c   : > { %s1561_s4 = sld [smem:[#allocation2 + %s419_s11]]  ;;  %v244_v0 = vsub.f32 %v243_v58, %v235_v51  ;;  %s424_s23 = sadd.s32 73, %s1216_s24  ;;  %v375_v51 = vstv %s1462_s7  ;;  %v439_v60 = vstv %s1533_s20 }
  0x7d   : > { %2549 = sst [smem:[#allocation19_spill]] %s1538_s8  ;;  %s425_s11 = sadd.s32 %s1213_s22, %s424_s23  ;;  %v376_v57 = vadd.f32 %v375_v51, %v374_v46 }
  0x7e   : > { %v303_v1 = vstv %s2554_s16  ;;  %s2558_s1 = sld [smem:[#allocation23_spill]]  ;;  %s427_s21 = sadd.s32 74, %s1216_s24  ;;  %v245_v9 = vsub.f32 %v244_v0, %v242_v63  ;;  %v390_v63 = vstv %s1495_s14  ;;  %v434_v0 = vadd.f32 %v433_v56, %v431_v55 }
  0x7f   : > { %v305_v2 = vstv %s2555_s15  ;;  %s1572_s0 = sld [smem:[#allocation2 + %s422_s26]]  ;;  %v304_v7 = vmul.f32 %v1424_v13, %v303_v1  ;;  %s428_s15 = sadd.s32 %s1213_s22, %s427_s21  ;;  %v438_v1 = vmul.f32 %v1424_v13, %v437_v59  ;;  %vm381_vm7 = vcmp.ge.f32.partialorder %v376_v57, 0.0 }
  0x80   : > { %2556 = sst [smem:[#allocation20_spill]] %s1556_s6  ;;  %v306_v8 = vmul.f32 %v305_v2, %v1426_v14  ;;  %s464_s2 = sadd.s32 80, %s1216_s24  ;;  %vm1612_vm10 = vcmp.ge.f32.partialorder %v245_v9, 0.0  ;;  %v440_v2 = vmul.f32 %v439_v60, %v1426_v14 }
  0x81   : > { %s1575_s30 = sld [smem:[#allocation2 + %s425_s11]]  ;;  %v256_v5 = vstv %s2557_s29  ;;  %s465_s11 = sadd.s32 %s1213_s22, %s464_s2  ;;  %vm250_vm12 = vmand %vm1608_vm9, %vm1612_vm10 }
  0x82   : > { %s2562_s16 = sld [smem:[#allocation28_spill]]  ;;  %s467_s6 = sadd.s32 81, %s1216_s24  ;;  %v257_v12 = vadd.f32 %v256_v5, %v255_v3  ;;  %v307_v18 = vadd.f32 %v306_v8, %v304_v7  ;;  %v435_v5 = vstv %s1522_s17  ;;  %v441_v15 = vadd.f32 %v440_v2, %v438_v1 }
  0x83   : > { %s2563_s26 = sld [smem:[#allocation31_spill]]  ;;  %s468_s21 = sadd.s32 %s1213_s22, %s467_s6 }
  0x84   : > { %v301_v10 = vstv %s2558_s1  ;;  %s1589_s23 = sld [smem:[#allocation2 + %s428_s15]]  ;;  %s470_s1 = sadd.s32 82, %s1216_s24  ;;  %vm258_vm11 = vcmp.lt.f32.partialorder %v257_v12, %v193_v11 }
  0x85   : > { %s1592_s29 = sld [smem:[#allocation2 + %s465_s11]]  ;;  %v302_v17 = vadd.f32 %v301_v10, %v300_v6  ;;  %s471_s2 = sadd.s32 %s1213_s22, %s470_s1  ;;  %vm1645_vm13 = vmand %vm250_vm12, %vm258_vm11  ;;  %v452_v6 = vstv %s1561_s4  ;;  %v454_v7 = vstv %s1572_s0 }
  0x86   : > { %s2565_s8 = sld [smem:[#allocation27_spill]]  ;;  %s473_s12 = sadd.s32 83, %s1216_s24  ;;  %v260_v41 = vsel %vm1645_vm13, %v257_v12, %v193_v11  ;;  %v1739_v11 = vadd.f32 %v390_v63, %v389_v61  ;;  %v1744_v12 = vadd.f32 %v435_v5, %v434_v0 }
  0x87   : > { %2559 = sst [smem:[#allocation24_spill]] %s1575_s30  ;;  %s474_s6 = sadd.s32 %s1213_s22, %s473_s12  ;;  %vm313_vm14 = vcmp.ge.f32.partialorder %v302_v17, 0.0 }
  0x88   : > { %s2564_s30 = sld [smem:[#allocation26_spill]]  ;;  %v320_v16 = vstv %s2562_s16  ;;  %s476_s16 = sadd.s32 84, %s1216_s24 }
  0x89   : > { %v363_v19 = vstv %s2563_s26  ;;  %s1603_s15 = sld [smem:[#allocation2 + %s468_s21]]  ;;  %v321_v26 = vmul.f32 %v320_v16, %v1426_v14  ;;  %s477_s26 = sadd.s32 %s1213_s22, %s476_s16 }
  0x8a   : > { %s1618_s9 = sld [smem:[#allocation2 + %s471_s2]]  ;;  %v364_v27 = vmul.f32 %v1424_v13, %v363_v19  ;;  %s479_s21 = sadd.s32 85, %s1216_s24  ;;  %v455_v19 = vmul.f32 %v454_v7, %v1426_v14 }
  0x8b   : > { %s1636_s11 = sld [smem:[#allocation2 + %s477_s26]]  ;;  %s480_s1 = sadd.s32 %s1213_s22, %s479_s21  ;;  %v322_v33 = vadd.f32 %v321_v26, %v319_v25  ;;  %v497_v8 = vstv %s1592_s29 }
  0x8c   : > { %v310_v24 = vstv %s2565_s8  ;;  %s1627_s8 = sld [smem:[#allocation2 + %s474_s6]]  ;;  %s482_s2 = sadd.s32 86, %s1216_s24  ;;  %v367_v36 = vadd.f32 %v366_v28, %v364_v27  ;;  %v498_v20 = vmul.f32 %v1424_v13, %v497_v8 }
  0x8d   : > { %v311_v30 = vsub.f32 %v310_v24, %v302_v17  ;;  %s1641_s12 = sld [smem:[#allocation2 + %s480_s1]]  ;;  %s483_s6 = sadd.s32 %s1213_s22, %s482_s2 }
  0x8e   : > { %v308_v23 = vstv %s2564_s30  ;;  %s2570_s30 = sld [smem:[#allocation29_spill]]  ;;  %s485_s27 = sadd.s32 87, %s1216_s24  ;;  %v1668_v45 = vadd.f32 %v368_v40, %v367_v36 }
  0x8f   : > { %v309_v29 = vadd.f32 %v308_v23, %v307_v18  ;;  %s1652_s28 = sld [smem:[#allocation2 + %s483_s6]]  ;;  %s486_s16 = sadd.s32 %s1213_s22, %s485_s27  ;;  %v499_v9 = vstv %s1603_s15  ;;  %v453_v18 = vmul.f32 %v1424_v13, %v452_v6 }
  0x90   : > { %s488_s26 = sadd.s32 88, %s1216_s24  ;;  %s491_s1 = sadd.s32 89, %s1216_s24  ;;  %v378_v58 = vsub.f32 %v377_v52, %v1668_v45  ;;  %vm380_vm5 = vcmp.ge.f32.partialorder %v1668_v45, 0.0  ;;  %v500_v21 = vmul.f32 %v499_v9, %v1426_v14 }
  0x91   : > { %v312_v39 = vsub.f32 %v311_v30, %v309_v29  ;;  %vm314_vm15 = vcmp.ge.f32.partialorder %v309_v29, 0.0  ;;  %s489_s21 = sadd.s32 %s1213_s22, %s488_s26  ;;  %s492_s2 = sadd.s32 %s1213_s22, %s491_s1  ;;  %vm1760_vm8 = vmand %vm380_vm5, %vm381_vm7  ;;  %v506_v25 = vstv %s1636_s11  ;;  %v456_v28 = vadd.f32 %v455_v19, %v453_v18 }
  0x92   : > { %s1665_s19 = sld [smem:[#allocation2 + %s489_s21]]  ;;  %s494_s6 = sadd.s32 90, %s1216_s24  ;;  %vm1676_vm0 = vmand %vm313_vm14, %vm314_vm15  ;;  %v379_v3 = vsub.f32 %v378_v58, %v376_v57  ;;  %v504_v24 = vstv %s1627_s8  ;;  %v501_v29 = vadd.f32 %v500_v21, %v498_v20  ;;  %v507_v31 = vmul.f32 %v506_v25, %v1426_v14 }
  0x93   : > { %vm1680_vm1 = vcmp.ge.f32.partialorder %v312_v39, 0.0  ;;  %s1686_s18 = sld [smem:[#allocation2 + %s492_s2]]  ;;  %s495_s25 = sadd.s32 %s1213_s22, %s494_s6  ;;  %v505_v30 = vmul.f32 %v1424_v13, %v504_v24  ;;  %vm447_vm14 = vcmp.ge.f32.partialorder %v1744_v12, 0.0  ;;  %v509_v44 = vstv %s1641_s12 }
  0x94   : > { %v323_v35 = vstv %s2570_s30  ;;  %s1658_s30 = sld [smem:[#allocation2 + %s486_s16]]  ;;  %s531_s5 = sadd.s32 96, %s1216_s24  ;;  %vm317_vm3 = vmand %vm1676_vm0, %vm1680_vm1  ;;  %vm1764_vm9 = vcmp.ge.f32.partialorder %v379_v3, 0.0 }
  0x95   : > { %v324_v42 = vadd.f32 %v323_v35, %v322_v33  ;;  %s1691_s10 = sld [smem:[#allocation2 + %s495_s25]]  ;;  %s532_s7 = sadd.s32 %s1213_s22, %s531_s5  ;;  %vm384_vm11 = vmand %vm1760_vm8, %vm1764_vm9  ;;  %v502_v33 = vstv %s1618_s9  ;;  %v508_v43 = vadd.f32 %v507_v31, %v505_v30  ;;  %v511_v45 = vstv %s1652_s28 }
  0x96   : > { %s534_s13 = sadd.s32 97, %s1216_s24  ;;  %s1705_s27 = sld [smem:[#allocation2 + %s532_s7]] }
  0x97   : > { %vm325_vm2 = vcmp.lt.f32.partialorder %v324_v42, %v260_v41  ;;  %s535_s16 = sadd.s32 %s1213_s22, %s534_s13  ;;  %s537_s21 = sadd.s32 98, %s1216_s24  ;;  %v510_v55 = vadd.f32 %v509_v44, %v508_v43 }
  0x98   : > { %s1708_s26 = sld [smem:[#allocation2 + %s535_s16]]  ;;  %s538_s1 = sadd.s32 %s1213_s22, %s537_s21  ;;  %vm1714_vm4 = vmand %vm317_vm3, %vm325_vm2  ;;  %v521_v36 = vstv %s1665_s19 }
  0x99   : > { %s540_s2 = sadd.s32 99, %s1216_s24  ;;  %s1721_s3 = sld [smem:[#allocation2 + %s538_s1]]  ;;  %v1736_v10 = vsel %vm1714_vm4, %v324_v42, %v260_v41  ;;  %v1819_v42 = vadd.f32 %v502_v33, %v501_v29  ;;  %v522_v47 = vmul.f32 %v521_v36, %v1426_v14  ;;  %v524_v58 = vstv %s1686_s18 }
  0x9a   : > { %s541_s20 = sadd.s32 %s1213_s22, %s540_s2  ;;  %s2579_s25 = sld [smem:[#allocation19_spill]]  ;;  %vm392_vm10 = vcmp.lt.f32.partialorder %v1739_v11, %v1736_v10  ;;  %v519_v35 = vstv %s1658_s30  ;;  %vm515_vm8 = vcmp.ge.f32.partialorder %v510_v55, 0.0 }
  0x9b   : > { %s1725_s6 = sld [smem:[#allocation2 + %s541_s20]]  ;;  %s543_s5 = sadd.s32 100, %s1216_s24  ;;  %vm1807_vm12 = vmand %vm384_vm11, %vm392_vm10  ;;  %v520_v46 = vmul.f32 %v1424_v13, %v519_v35  ;;  %v512_v56 = vsub.f32 %v511_v45, %v1819_v42  ;;  %vm514_vm7 = vcmp.ge.f32.partialorder %v1819_v42, 0.0 }
  0x9c   : > { %s2580_s7 = sld [smem:[#allocation20_spill]]  ;;  %s544_s14 = sadd.s32 %s1213_s22, %s543_s5  ;;  %v564_v39 = vstv %s1705_s27  ;;  %v394_v48 = vsel %vm1807_vm12, %v1739_v11, %v1736_v10  ;;  %vm1912_vm9 = vmand %vm514_vm7, %vm515_vm8 }
  0x9d   : > { %s546_s13 = sadd.s32 101, %s1216_s24  ;;  %s1741_s17 = sld [smem:[#allocation2 + %s544_s14]]  ;;  %v565_v49 = vmul.f32 %v1424_v13, %v564_v39  ;;  %v523_v57 = vadd.f32 %v522_v47, %v520_v46  ;;  %v513_v0 = vsub.f32 %v512_v56, %v510_v55 }
  0x9e   : > { %s547_s4 = sadd.s32 %s1213_s22, %s546_s13  ;;  %s549_s29 = sadd.s32 102, %s1216_s24  ;;  %v566_v40 = vstv %s1708_s26 }
  0x9f   : > { %s1748_s0 = sld [smem:[#allocation2 + %s547_s4]]  ;;  %s550_s15 = sadd.s32 %s1213_s22, %s549_s29  ;;  %v567_v50 = vmul.f32 %v566_v40, %v1426_v14  ;;  %v569_v63 = vstv %s1721_s3  ;;  %v525_v5 = vadd.f32 %v524_v58, %v523_v57  ;;  %vm1916_vm10 = vcmp.ge.f32.partialorder %v513_v0, 0.0 }
  0xa0   : > { %v442_v16 = vstv %s2579_s25  ;;  %s552_s16 = sadd.s32 103, %s1216_s24  ;;  %s1770_s21 = sld [smem:[#allocation2 + %s550_s15]]  ;;  %vm518_vm11 = vmand %vm1912_vm9, %vm1916_vm10 }
  0xa1   : > { %s2585_s1 = sld [smem:[#allocation24_spill]]  ;;  %s553_s2 = sadd.s32 %s1213_s22, %s552_s16  ;;  %v443_v26 = vadd.f32 %v442_v16, %v441_v15  ;;  %v571_v53 = vstv %s1725_s6  ;;  %v568_v59 = vadd.f32 %v567_v50, %v565_v49 }
  0xa2   : > { %v444_v17 = vstv %s2580_s7  ;;  %s1773_s20 = sld [smem:[#allocation2 + %s553_s2]]  ;;  %s555_s25 = sadd.s32 104, %s1216_s24  ;;  %v572_v60 = vmul.f32 %v1424_v13, %v571_v53 }
  0xa3   : > { %v445_v27 = vsub.f32 %v444_v17, %v1744_v12  ;;  %s556_s8 = sadd.s32 %s1213_s22, %s555_s25  ;;  %s558_s11 = sadd.s32 105, %s1216_s24  ;;  %vm448_vm15 = vcmp.ge.f32.partialorder %v443_v26, 0.0  ;;  %v573_v54 = vstv %s1741_s17  ;;  %v570_v6 = vadd.f32 %v569_v63, %v568_v59 }
  0xa4   : > { %s1787_s5 = sld [smem:[#allocation2 + %s556_s8]]  ;;  %s559_s7 = sadd.s32 %s1213_s22, %s558_s11  ;;  %vm1842_vm0 = vmand %vm447_vm14, %vm448_vm15  ;;  %v574_v61 = vmul.f32 %v573_v54, %v1426_v14 }
  0xa5   : > { %s1792_s14 = sld [smem:[#allocation2 + %s559_s7]]  ;;  %s561_s13 = sadd.s32 106, %s1216_s24  ;;  %v446_v38 = vsub.f32 %v445_v27, %v443_v26  ;;  %v576_v10 = vstv %s1748_s0 }
  0xa6   : > { %s562_s4 = sadd.s32 %s1213_s22, %s561_s13  ;;  %s598_s29 = sadd.s32 112, %s1216_s24  ;;  %v575_v7 = vadd.f32 %v574_v61, %v572_v60  ;;  %v578_v11 = vstv %s1770_s21 }
  0xa7   : > { %v457_v32 = vstv %s2585_s1  ;;  %s1812_s9 = sld [smem:[#allocation2 + %s562_s4]]  ;;  %s599_s30 = sadd.s32 %s1213_s22, %s598_s29  ;;  %vm1846_vm1 = vcmp.ge.f32.partialorder %v446_v38, 0.0  ;;  %v579_v24 = vsub.f32 %v578_v11, %v570_v6 }
  0xa8   : > { %v1817_v41 = vadd.f32 %v457_v32, %v456_v28  ;;  %s1821_s19 = sld [smem:[#allocation2 + %s599_s30]]  ;;  %s601_s15 = sadd.s32 113, %s1216_s24  ;;  %vm451_vm3 = vmand %vm1842_vm0, %vm1846_vm1  ;;  %v586_v8 = vstv %s1773_s20  ;;  %v577_v23 = vadd.f32 %v576_v10, %v575_v7  ;;  %vm581_vm0 = vcmp.ge.f32.partialorder %v570_v6, 0.0 }
  0xa9   : > { %s602_s27 = sadd.s32 %s1213_s22, %s601_s15  ;;  %s604_s26 = sadd.s32 114, %s1216_s24  ;;  %v587_v21 = vmul.f32 %v1424_v13, %v586_v8 }
  0xaa   : > { %s1836_s12 = sld [smem:[#allocation2 + %s602_s27]]  ;;  %s605_s28 = sadd.s32 %s1213_s22, %s604_s26  ;;  %vm459_vm2 = vcmp.lt.f32.partialorder %v1817_v41, %v394_v48  ;;  %v588_v9 = vstv %s1787_s5  ;;  %v580_v31 = vsub.f32 %v579_v24, %v577_v23  ;;  %vm582_vm1 = vcmp.ge.f32.partialorder %v577_v23, 0.0 }
  0xab   : > { %s1852_s16 = sld [smem:[#allocation2 + %s605_s28]]  ;;  %s607_s1 = sadd.s32 115, %s1216_s24  ;;  %vm1887_vm5 = vmand %vm451_vm3, %vm459_vm2  ;;  %v589_v22 = vmul.f32 %v588_v9, %v1426_v14  ;;  %v591_v32 = vstv %s1792_s14 }
  0xac   : > { %s608_s2 = sadd.s32 %s1213_s22, %s607_s1  ;;  %s610_s25 = sadd.s32 116, %s1216_s24  ;;  %v461_v16 = vsel %vm1887_vm5, %v1817_v41, %v394_v48  ;;  %vm1988_vm2 = vmand %vm581_vm0, %vm582_vm1  ;;  %vm1992_vm3 = vcmp.ge.f32.partialorder %v580_v31, 0.0 }
  0xad   : > { %s1859_s8 = sld [smem:[#allocation2 + %s608_s2]]  ;;  %s611_s6 = sadd.s32 %s1213_s22, %s610_s25  ;;  %vm526_vm14 = vcmp.lt.f32.partialorder %v525_v5, %v461_v16  ;;  %v590_v29 = vadd.f32 %v589_v22, %v587_v21  ;;  %vm585_vm7 = vmand %vm1988_vm2, %vm1992_vm3 }
  0xae   : > { %s1869_s17 = sld [smem:[#allocation2 + %s611_s6]]  ;;  %s613_s11 = sadd.s32 117, %s1216_s24  ;;  %v631_v1 = vstv %s1821_s19  ;;  %vm1953_vm15 = vmand %vm518_vm11, %vm526_vm14 }
  0xaf   : > { %s614_s7 = sadd.s32 %s1213_s22, %s613_s11  ;;  %s616_s13 = sadd.s32 118, %s1216_s24  ;;  %v632_v12 = vmul.f32 %v1424_v13, %v631_v1  ;;  %v528_v41 = vsel %vm1953_vm15, %v525_v5, %v461_v16  ;;  %v592_v42 = vadd.f32 %v591_v32, %v590_v29 }
  0xb0   : > { %s1875_s4 = sld [smem:[#allocation2 + %s614_s7]]  ;;  %s617_s18 = sadd.s32 %s1213_s22, %s616_s13  ;;  %v633_v2 = vstv %s1836_s12 }
  0xb1   : > { %s1892_s3 = sld [smem:[#allocation2 + %s617_s18]]  ;;  %s619_s29 = sadd.s32 119, %s1216_s24  ;;  %v634_v15 = vmul.f32 %v633_v2, %v1426_v14  ;;  %v636_v28 = vstv %s1852_s16  ;;  %vm593_vm8 = vcmp.lt.f32.partialorder %v592_v42, %v528_v41 }
  0xb2   : > { %s620_s30 = sadd.s32 %s1213_s22, %s619_s29  ;;  %s622_s19 = sadd.s32 120, %s1216_s24  ;;  %vm2050_vm9 = vmand %vm585_vm7, %vm593_vm8 }
  0xb3   : > { %s1901_s15 = sld [smem:[#allocation2 + %s620_s30]]  ;;  %s623_s27 = sadd.s32 %s1213_s22, %s622_s19  ;;  %v638_v19 = vstv %s1859_s8  ;;  %v635_v25 = vadd.f32 %v634_v15, %v632_v12  ;;  %v595_v12 = vsel %vm2050_vm9, %v592_v42, %v528_v41 }
  0xb4   : > { %s1920_s0 = sld [smem:[#allocation2 + %s623_s27]]  ;;  %s625_s21 = sadd.s32 121, %s1216_s24  ;;  %v640_v20 = vstv %s1869_s17  ;;  %v639_v26 = vmul.f32 %v1424_v13, %v638_v19 }
  0xb5   : > { %s2598_s20 = sld [smem:[#allocation17_spill]]  ;;  %s626_s5 = sadd.s32 %s1213_s22, %s625_s21  ;;  %v641_v27 = vmul.f32 %v640_v20, %v1426_v14  ;;  %v1963_v33 = vadd.f32 %v636_v28, %v635_v25 }
  0xb6   : > { %s628_s26 = sadd.s32 122, %s1216_s24  ;;  %s1929_s12 = sld [smem:[#allocation2 + %s626_s5]]  ;;  %v643_v39 = vstv %s1875_s4 }
  0xb7   : > { %s629_s28 = sadd.s32 %s1213_s22, %s628_s26  ;;  %s2599_s25 = sadd.s32 1, %s1216_s24  ;;  %v642_v35 = vadd.f32 %v641_v27, %v639_v26  ;;  %v645_v40 = vstv %s1892_s3  ;;  %vm648_vm10 = vcmp.ge.f32.partialorder %v1963_v33, 0.0 }
  0xb8   : > { %s1936_s1 = sld [smem:[#allocation2 + %s629_s28]]  ;;  %s2600_s17 = sadd.s32 2, %s1216_s24  ;;  %v646_v49 = vsub.f32 %v645_v40, %v1963_v33 }
  0xb9   : > { %s2603_s7 = sadd.s32 3, %s1216_s24  ;;  %v653_v36 = vstv %s1901_s15  ;;  %s2604_s29 = sadd.s32 4, %s1216_s24  ;;  %v644_v48 = vadd.f32 %v643_v39, %v642_v35 }
  0xba   : > { %v655_v38 = vstv %s1920_s0  ;;  %s2605_s19 = sadd.s32 5, %s1216_s24  ;;  %s2606_s0 = sadd.s32 6, %s1216_s24  ;;  %v654_v45 = vmul.f32 %v1424_v13, %v653_v36 }
  0xbb   : > { %s667_s2 = sadd.s32 %s2598_s20, %s1216_s24  ;;  %s669_s8 = sadd.s32 %s2598_s20, %s2599_s25  ;;  %v656_v46 = vmul.f32 %v655_v38, %v1426_v14  ;;  %v647_v60 = vsub.f32 %v646_v49, %v644_v48  ;;  %vm649_vm11 = vcmp.ge.f32.partialorder %v644_v48, 0.0 }
  0xbc   : > { %s1943_s22 = sld [smem:[#allocation2 + %s667_s2]]  ;;  %s671_s11 = sadd.s32 %s2598_s20, %s2600_s17  ;;  %v658_v61 = vstv %s1929_s12  ;;  %vm2084_vm14 = vmand %vm648_vm10, %vm649_vm11 }
  0xbd   : > { %s1948_s6 = sld [smem:[#allocation2 + %s669_s8]]  ;;  %s673_s13 = sadd.s32 %s2598_s20, %s2603_s7  ;;  %v657_v55 = vadd.f32 %v656_v46, %v654_v45 }
  0xbe   : > { %s1958_s16 = sld [smem:[#allocation2 + %s671_s11]]  ;;  %s675_s30 = sadd.s32 %s2598_s20, %s2604_s29 }
  0xbf   : > { %s1967_s18 = sld [smem:[#allocation2 + %s673_s13]]  ;;  %s677_s27 = sadd.s32 %s2598_s20, %s2605_s19  ;;  %v659_v10 = vadd.f32 %v658_v61, %v657_v55 }
  0xc0   : > { %s1974_s14 = sld [smem:[#allocation2 + %s675_s30]]  ;;  %s679_s21 = sadd.s32 %s2598_s20, %s2606_s0 }
  0xc1   : > { %s1981_s15 = sld [smem:[#allocation2 + %s677_s27]]  ;;  %s2611_s3 = sadd.s32 7, %s1216_s24  ;;  %vm660_vm1 = vcmp.lt.f32.partialorder %v659_v10, %v595_v12 }
  0xc2   : > { %s1998_s4 = sld [smem:[#allocation2 + %s679_s21]]  ;;  %s681_s5 = sadd.s32 %s2598_s20, %s2611_s3  ;;  %v689_v47 = vstv %s1943_s22 }
  0xc3   : > { %s2005_s26 = sld [smem:[#allocation2 + %s681_s5]]  ;;  %s2612_s28 = sadd.s32 8, %s1216_s24  ;;  %v690_v50 = vmul.f32 %v1424_v13, %v689_v47  ;;  %v691_v51 = vstv %s1948_s6 }
  0xc4   : > { %s683_s2 = sadd.s32 %s2598_s20, %s2612_s28  ;;  %s2613_s25 = sld [smem:[#allocation18_spill]]  ;;  %v692_v52 = vmul.f32 %v691_v51, %v1426_v14  ;;  %v694_v53 = vstv %s1958_s16 }
  0xc5   : > { %s2012_s8 = sld [smem:[#allocation2 + %s683_s2]]  ;;  %s2614_s17 = sadd.s32 9, %s1216_s24  ;;  %v696_v54 = vstv %s1967_s18 }
  0xc6   : > { %s685_s11 = sadd.s32 %s2598_s20, %s2614_s17  ;;  %s2615_s7 = sadd.s32 10, %s1216_s24  ;;  %v693_v56 = vadd.f32 %v692_v52, %v690_v50  ;;  %v697_v57 = vmul.f32 %v1424_v13, %v696_v54  ;;  %v698_v58 = vstv %s1974_s14  ;;  %v462_v54 = vstv %s1589_s23 }
  0xc7   : > { %s2022_s22 = sld [smem:[#allocation2 + %s685_s11]]  ;;  %s687_s6 = sadd.s32 %s2598_s20, %s2615_s7  ;;  %v699_v63 = vmul.f32 %v698_v58, %v1426_v14  ;;  %v701_v5 = vstv %s1981_s15 }
  0xc8   : > { %s2029_s13 = sld [smem:[#allocation2 + %s687_s6]]  ;;  %s2616_s29 = sadd.s32 16, %s1216_s24  ;;  %v2055_v1 = vadd.f32 %v694_v53, %v693_v56  ;;  %v703_v6 = vstv %s1998_s4 }
  0xc9   : > { %s723_s30 = sadd.s32 %s2598_s20, %s2616_s29  ;;  %s2617_s16 = sld [smem:[#allocation22_spill]]  ;;  %v700_v2 = vadd.f32 %v699_v63, %v697_v57  ;;  %v711_v7 = vstv %s2005_s26 }
  0xca   : > { %v194_v59 = vstv %s2613_s25  ;;  %s2039_s18 = sld [smem:[#allocation2 + %s723_s30]]  ;;  %s2618_s19 = sadd.s32 17, %s1216_s24  ;;  %v712_v16 = vmul.f32 %v1424_v13, %v711_v7  ;;  %v704_v19 = vsub.f32 %v703_v6, %v2055_v1 }
  0xcb   : > { %s725_s27 = sadd.s32 %s2598_s20, %s2618_s19  ;;  %s2621_s14 = sadd.s32 18, %s1216_s24  ;;  %v195_v8 = vsel %vm1579_vm6, %v194_v59, 0.0  ;;  %v713_v11 = vstv %s2012_s8  ;;  %vm2088_vm6 = vcmp.ge.f32.partialorder %v647_v60, 0.0  ;;  %v702_v18 = vadd.f32 %v701_v5, %v700_v2 }
  0xcc   : > { %s2057_s12 = sld [smem:[#allocation2 + %s725_s27]]  ;;  %s727_s0 = sadd.s32 %s2598_s20, %s2621_s14  ;;  %v714_v17 = vmul.f32 %v713_v11, %v1426_v14  ;;  %vm652_vm0 = vmand %vm2084_vm14, %vm2088_vm6 }
  0xcd   : > { %s2065_s21 = sld [smem:[#allocation2 + %s727_s0]]  ;;  %s2622_s3 = sadd.s32 19, %s1216_s24  ;;  %v705_v26 = vsub.f32 %v704_v19, %v702_v18  ;;  %v716_v27 = vstv %s2022_s22  ;;  %vm2146_vm2 = vmand %vm652_vm0, %vm660_vm1  ;;  %vm707_vm3 = vcmp.ge.f32.partialorder %v702_v18, 0.0  ;;  %v596_v18 = vstv %s1812_s9 }
  0xce   : > { %s729_s5 = sadd.s32 %s2598_s20, %s2622_s3  ;;  %s2623_s4 = sadd.s32 20, %s1216_s24  ;;  %v715_v34 = vadd.f32 %v714_v17, %v712_v16  ;;  %v662_v62 = vsel %vm2146_vm2, %v659_v10, %v595_v12 }
  0xcf   : > { %v261_v9 = vstv %s2617_s16  ;;  %s2074_s15 = sld [smem:[#allocation2 + %s729_s5]]  ;;  %s731_s28 = sadd.s32 %s2598_s20, %s2623_s4  ;;  %vm2181_vm7 = vcmp.ge.f32.partialorder %v705_v26, 0.0 }
  0xd0   : > { %s2094_s26 = sld [smem:[#allocation2 + %s731_s28]]  ;;  %s2628_s2 = sadd.s32 21, %s1216_s24  ;;  %v745_v20 = vstv %s2039_s18  ;;  %v262_v21 = vsel %vm1645_vm13, %v261_v9, %v195_v8  ;;  %vm706_vm13 = vcmp.ge.f32.partialorder %v2055_v1, 0.0  ;;  %v717_v39 = vadd.f32 %v716_v27, %v715_v34 }
  0xd1   : > { %s2629_s25 = sld [smem:[#allocation30_spill]]  ;;  %s733_s8 = sadd.s32 %s2598_s20, %s2628_s2  ;;  %v746_v22 = vmul.f32 %v1424_v13, %v745_v20  ;;  %v529_v1 = vstv %s1691_s10 }
  0xd2   : > { %s2100_s17 = sld [smem:[#allocation2 + %s733_s8]]  ;;  %s2630_s11 = sadd.s32 22, %s1216_s24  ;;  %v747_v23 = vstv %s2057_s12  ;;  %vm718_vm10 = vcmp.lt.f32.partialorder %v717_v39, %v662_v62 }
  0xd3   : > { %s735_s7 = sadd.s32 %s2598_s20, %s2630_s11  ;;  %s2631_s29 = sadd.s32 23, %s1216_s24  ;;  %v748_v25 = vmul.f32 %v747_v23, %v1426_v14  ;;  %v750_v28 = vstv %s2065_s21 }
  0xd4   : > { %s2105_s6 = sld [smem:[#allocation2 + %s735_s7]]  ;;  %s737_s30 = sadd.s32 %s2598_s20, %s2631_s29 }
  0xd5   : > { %s2117_s16 = sld [smem:[#allocation2 + %s737_s30]]  ;;  %s2632_s19 = sadd.s32 24, %s1216_s24  ;;  %v752_v29 = vstv %s2074_s15  ;;  %v749_v32 = vadd.f32 %v748_v25, %v746_v22  ;;  %v663_v25 = vstv %s1936_s1 }
  0xd6   : > { %s739_s27 = sadd.s32 %s2598_s20, %s2632_s19  ;;  %s2633_s14 = sadd.s32 25, %s1216_s24  ;;  %v753_v33 = vmul.f32 %v1424_v13, %v752_v29  ;;  %v754_v35 = vstv %s2094_s26 }
  0xd7   : > { %v328_v24 = vstv %s2629_s25  ;;  %s2126_s18 = sld [smem:[#allocation2 + %s739_s27]]  ;;  %s741_s0 = sadd.s32 %s2598_s20, %s2633_s14  ;;  %v755_v38 = vmul.f32 %v754_v35, %v1426_v14  ;;  %v751_v40 = vadd.f32 %v750_v28, %v749_v32 }
  0xd8   : > { %s2133_s3 = sld [smem:[#allocation2 + %s741_s0]]  ;;  %s2634_s12 = sadd.s32 26, %s1216_s24  ;;  %v329_v36 = vsel %vm1714_vm4, %v328_v24, %v262_v21  ;;  %v757_v41 = vstv %s2100_s17  ;;  %vm2177_vm4 = vmand %vm706_vm13, %vm707_vm3 }
  0xd9   : > { %s743_s5 = sadd.s32 %s2598_s20, %s2634_s12  ;;  %s2637_s21 = sadd.s32 32, %s1216_s24  ;;  %v756_v45 = vadd.f32 %v755_v38, %v753_v33  ;;  %vm710_vm8 = vmand %vm2177_vm4, %vm2181_vm7  ;;  %vm762_vm11 = vcmp.ge.f32.partialorder %v751_v40, 0.0 }
  0xda   : > { %s2150_s22 = sld [smem:[#allocation2 + %s743_s5]]  ;;  %s779_s15 = sadd.s32 %s2598_s20, %s2637_s21  ;;  %v759_v42 = vstv %s2105_s6 }
  0xdb   : > { %s2638_s4 = sld [smem:[#allocation32_spill]]  ;;  %s2639_s2 = sadd.s32 33, %s1216_s24  ;;  %v767_v46 = vstv %s2117_s16  ;;  %v760_v48 = vsub.f32 %v759_v42, %v751_v40  ;;  %v758_v51 = vadd.f32 %v757_v41, %v756_v45 }
  0xdc   : > { %s2160_s28 = sld [smem:[#allocation2 + %s779_s15]]  ;;  %s781_s25 = sadd.s32 %s2598_s20, %s2639_s2  ;;  %v768_v49 = vmul.f32 %v1424_v13, %v767_v46 }
  0xdd   : > { %s2167_s26 = sld [smem:[#allocation2 + %s781_s25]]  ;;  %s2640_s8 = sadd.s32 34, %s1216_s24  ;;  %v769_v50 = vstv %s2126_s18  ;;  %v761_v57 = vsub.f32 %v760_v48, %v758_v51  ;;  %vm763_vm14 = vcmp.ge.f32.partialorder %v758_v51, 0.0 }
  0xde   : > { %s783_s11 = sadd.s32 %s2598_s20, %s2640_s8  ;;  %s2645_s7 = sadd.s32 35, %s1216_s24  ;;  %v770_v52 = vmul.f32 %v769_v50, %v1426_v14  ;;  %v772_v58 = vstv %s2133_s3 }
  0xdf   : > { %s2186_s17 = sld [smem:[#allocation2 + %s783_s11]]  ;;  %s785_s6 = sadd.s32 %s2598_s20, %s2645_s7  ;;  %vm2272_vm6 = vcmp.ge.f32.partialorder %v761_v57, 0.0 }
  0xe0   : > { %s2194_s29 = sld [smem:[#allocation2 + %s785_s6]]  ;;  %s2646_s30 = sadd.s32 36, %s1216_s24  ;;  %v771_v55 = vadd.f32 %v770_v52, %v768_v49  ;;  %v777_v51 = vstv %s2150_s22 }
  0xe1   : > { %v395_v47 = vstv %s2638_s4  ;;  %s787_s19 = sadd.s32 %s2598_s20, %s2646_s30  ;;  %s2647_s27 = sadd.s32 37, %s1216_s24 }
  0xe2   : > { %s2200_s16 = sld [smem:[#allocation2 + %s787_s19]]  ;;  %s789_s14 = sadd.s32 %s2598_s20, %s2647_s27  ;;  %v396_v53 = vsel %vm1807_vm12, %v395_v47, %v329_v36  ;;  %v801_v56 = vstv %s2160_s28  ;;  %vm2237_vm12 = vmand %vm710_vm8, %vm718_vm10  ;;  %v773_v6 = vadd.f32 %v772_v58, %v771_v55 }
  0xe3   : > { %s2209_s18 = sld [smem:[#allocation2 + %s789_s14]]  ;;  %s2648_s0 = sadd.s32 38, %s1216_s24  ;;  %v802_v37 = vmul.f32 %v1424_v13, %v801_v56  ;;  %v803_v59 = vstv %s2167_s26  ;;  %v463_v63 = vsel %vm1887_vm5, %v462_v54, %v396_v53  ;;  %v720_v9 = vsel %vm2237_vm12, %v717_v39, %v662_v62  ;;  %vm2268_vm5 = vmand %vm762_vm11, %vm763_vm14 }
  0xe4   : > { %s791_s12 = sadd.s32 %s2598_s20, %s2648_s0  ;;  %s2649_s21 = sadd.s32 39, %s1216_s24  ;;  %v804_v61 = vmul.f32 %v803_v59, %v1426_v14  ;;  %v530_v17 = vsel %vm1953_vm15, %v529_v1, %v463_v63  ;;  %vm766_vm0 = vmand %vm2268_vm5, %vm2272_vm6  ;;  %vm774_vm1 = vcmp.lt.f32.partialorder %v773_v6, %v720_v9  ;;  %v721_v62 = vstv %s2029_s13 }
  0xe5   : > { %s2217_s5 = sld [smem:[#allocation2 + %s791_s12]]  ;;  %s793_s15 = sadd.s32 %s2598_s20, %s2649_s21  ;;  %v806_v2 = vstv %s2186_s17  ;;  %v597_v34 = vsel %vm2050_vm9, %v596_v18, %v530_v17  ;;  %vm2330_vm13 = vmand %vm766_vm0, %vm774_vm1 }
  0xe6   : > { %s2224_s4 = sld [smem:[#allocation2 + %s793_s15]]  ;;  %s2650_s2 = sadd.s32 40, %s1216_s24  ;;  %v808_v5 = vstv %s2194_s29  ;;  %v805_v7 = vadd.f32 %v804_v61, %v802_v37  ;;  %v664_v35 = vsel %vm2146_vm2, %v663_v25, %v597_v34  ;;  %v776_v39 = vsel %vm2330_vm13, %v773_v6, %v720_v9 }
  0xe7   : > { %s795_s25 = sadd.s32 %s2598_s20, %s2650_s2  ;;  %s2653_s3 = sadd.s32 41, %s1216_s24  ;;  %v809_v3 = vmul.f32 %v1424_v13, %v808_v5  ;;  %v722_v50 = vsel %vm2237_vm12, %v721_v62, %v664_v35 }
  0xe8   : > { %s2241_s23 = sld [smem:[#allocation2 + %s795_s25]]  ;;  %s797_s28 = sadd.s32 %s2598_s20, %s2653_s3  ;;  %v810_v8 = vstv %s2200_s16  ;;  %v807_v4 = vadd.f32 %v806_v2, %v805_v7  ;;  %v778_v59 = vsel %vm2330_vm13, %v777_v51, %v722_v50 }
  0xe9   : > { %s2250_s26 = sld [smem:[#allocation2 + %s797_s28]]  ;;  %s2654_s8 = sadd.s32 42, %s1216_s24  ;;  %v811_v12 = vmul.f32 %v810_v8, %v1426_v14  ;;  %v813_v15 = vstv %s2209_s18  ;;  %v1146_v8 = vmov 0.0  }
  0xea   : > { %s799_s11 = sadd.s32 %s2598_s20, %s2654_s8  ;;  %s2655_s10 = sadd.s32 48, %s1216_s24  ;;  %vm818_vm15 = vcmp.ge.f32.partialorder %v807_v4, 0.0 }
  0xeb   : > { %s2257_s7 = sld [smem:[#allocation2 + %s799_s11]]  ;;  %s835_s6 = sadd.s32 %s2598_s20, %s2655_s10  ;;  %v815_v16 = vstv %s2217_s5  ;;  %v812_v19 = vadd.f32 %v811_v12, %v809_v3 }
  0xec   : > { %s2277_s17 = sld [smem:[#allocation2 + %s835_s6]]  ;;  %s2660_s29 = sadd.s32 49, %s1216_s24  ;;  %v823_v20 = vstv %s2224_s4  ;;  %v816_v30 = vsub.f32 %v815_v16, %v807_v4 }
  0xed   : > { %s837_s30 = sadd.s32 %s2598_s20, %s2660_s29  ;;  %s2661_s16 = sadd.s32 50, %s1216_s24  ;;  %v824_v21 = vmul.f32 %v1424_v13, %v823_v20  ;;  %v814_v23 = vadd.f32 %v813_v15, %v812_v19 }
  0xee   : > { %s2284_s19 = sld [smem:[#allocation2 + %s837_s30]]  ;;  %s839_s27 = sadd.s32 %s2598_s20, %s2661_s16  ;;  %v825_v22 = vstv %s2241_s23 }
  0xef   : > { %s2293_s14 = sld [smem:[#allocation2 + %s839_s27]]  ;;  %s2662_s0 = sadd.s32 51, %s1216_s24  ;;  %v826_v24 = vmul.f32 %v825_v22, %v1426_v14  ;;  %v828_v26 = vstv %s2250_s26  ;;  %v817_v0 = vsub.f32 %v816_v30, %v814_v23  ;;  %vm819_vm9 = vcmp.ge.f32.partialorder %v814_v23, 0.0 }
  0xf0   : > { %s841_s18 = sadd.s32 %s2598_s20, %s2662_s0  ;;  %s2663_s12 = sadd.s32 52, %s1216_s24  ;;  %vm2359_vm3 = vmand %vm818_vm15, %vm819_vm9 }
  0xf1   : > { %s2304_s9 = sld [smem:[#allocation2 + %s841_s18]]  ;;  %s843_s5 = sadd.s32 %s2598_s20, %s2663_s12  ;;  %v827_v28 = vadd.f32 %v826_v24, %v824_v21  ;;  %vm2363_vm4 = vcmp.ge.f32.partialorder %v817_v0, 0.0  ;;  %v833_v61 = vstv %s2257_s7 }
  0xf2   : > { %s2310_s21 = sld [smem:[#allocation2 + %s843_s5]]  ;;  %s2664_s15 = sadd.s32 53, %s1216_s24  ;;  %v857_v29 = vstv %s2277_s17  ;;  %vm822_vm2 = vmand %vm2359_vm3, %vm2363_vm4 }
  0xf3   : > { %s845_s4 = sadd.s32 %s2598_s20, %s2664_s15  ;;  %s2665_s25 = sadd.s32 54, %s1216_s24  ;;  %v858_v32 = vmul.f32 %v1424_v13, %v857_v29  ;;  %v829_v36 = vadd.f32 %v828_v26, %v827_v28 }
  0xf4   : > { %s2319_s2 = sld [smem:[#allocation2 + %s845_s4]]  ;;  %s847_s23 = sadd.s32 %s2598_s20, %s2665_s25  ;;  %v859_v33 = vstv %s2284_s19 }
  0xf5   : > { %s2334_s1 = sld [smem:[#allocation2 + %s847_s23]]  ;;  %s2668_s3 = sadd.s32 55, %s1216_s24  ;;  %v860_v38 = vmul.f32 %v859_v33, %v1426_v14  ;;  %v862_v41 = vstv %s2293_s14  ;;  %vm830_vm7 = vcmp.lt.f32.partialorder %v829_v36, %v776_v39 }
  0xf6   : > { %s849_s28 = sadd.s32 %s2598_s20, %s2668_s3  ;;  %s2669_s8 = sadd.s32 56, %s1216_s24  ;;  %vm2392_vm8 = vmand %vm822_vm2, %vm830_vm7 }
  0xf7   : > { %s2340_s26 = sld [smem:[#allocation2 + %s849_s28]]  ;;  %s851_s11 = sadd.s32 %s2598_s20, %s2669_s8  ;;  %v864_v42 = vstv %s2304_s9  ;;  %v861_v43 = vadd.f32 %v860_v38, %v858_v32 }
  0xf8   : > { %s2349_s10 = sld [smem:[#allocation2 + %s851_s11]]  ;;  %s2670_s6 = sadd.s32 57, %s1216_s24  ;;  %v865_v44 = vmul.f32 %v1424_v13, %v864_v42  ;;  %v866_v45 = vstv %s2310_s21 }
  0xf9   : > { %s853_s29 = sadd.s32 %s2598_s20, %s2670_s6  ;;  %s2675_s30 = sadd.s32 58, %s1216_s24  ;;  %v867_v46 = vmul.f32 %v866_v45, %v1426_v14  ;;  %v863_v47 = vadd.f32 %v862_v41, %v861_v43 }
  0xfa   : > { %s2367_s17 = sld [smem:[#allocation2 + %s853_s29]]  ;;  %s855_s19 = sadd.s32 %s2598_s20, %s2675_s30  ;;  %v869_v48 = vstv %s2319_s2 }
  0xfb   : > { %s2676_s24 = sld [smem:[#allocation9_spill]]  ;;  %v871_v49 = vstv %s2334_s1  ;;  %v868_v52 = vadd.f32 %v867_v46, %v865_v44  ;;  %vm874_vm10 = vcmp.ge.f32.partialorder %v863_v47, 0.0  ;;  %s1147_s4 = smov [#allocation5]  }
  0xfc   : > { %s2382_s16 = sld [smem:[#allocation2 + %s855_s19]]  ;;  %v872_v54 = vsub.f32 %v871_v49, %v863_v47  ;;  %s1083_s2 = sshll.u32 %s1147_s4, 4  ;;  %s1084_s2 = int_to_ptr.vmem [resolvable:$false] %s1083_s2 }
  0xfd   : > { %v879_v53 = vstv %s2340_s26  ;;  %v870_v58 = vadd.f32 %v869_v48, %v868_v52  ;;  %s2679_s22 = sld [smem:[#allocation12_spill]]  ;;  %s1085_s25 = scalar_lea.vmem %s1084_s2, 1280 }
  0xfe   : > { %v880_v55 = vmul.f32 %v1424_v13, %v879_v53  ;;  %v881_v56 = vstv %s2349_s10  ;;  %v832_v13 = vsel %vm2392_vm8, %v829_v36, %v776_v39  ;;  %s2681_s12 = sld [smem:[#allocation34_spill]] }
  0xff   : > { %v882_v37 = vmul.f32 %v881_v56, %v1426_v14  ;;  %v873_v63 = vsub.f32 %v872_v54, %v870_v58  ;;  %vm875_vm12 = vcmp.ge.f32.partialorder %v870_v58, 0.0  ;;  %v834_v14 = vsel %vm2392_vm8, %v833_v61, %v778_v59 }
 0x100   : > { %v884_v60 = vstv %s2367_s17  ;;  %vm876_vm11 = vmand %vm874_vm10, %vm875_vm12 }
 0x101   : > { %s104_s20 = sand.u32 1, %s2676_s24   ;;  %v883_v1 = vadd.f32 %v882_v37, %v880_v55  ;;  %vm877_vm14 = vcmp.ge.f32.partialorder %v873_v63, 0.0 }
 0x102   : > { %s1013_s13 = smul.u32 40, %s104_s20  ;;  %vm878_vm5 = vmand %vm876_vm11, %vm877_vm14  ;;  %v889_v5 = vstv %s2382_s16  ;;  %s2419_s21 = scalar_lea.sflag [#allocation3], %s104_s20 }
 0x103   : > { %v885_v2 = vadd.f32 %v884_v60, %v883_v1  ;;  %s1014_s14 = smul.u32 640, %s2679_s22 }
 0x104   : > { %s106_s7 = scalar_lea.vmem [#allocation5], %s1013_s13 }
 0x105   : > { %vm886_vm6 = vcmp.lt.f32.partialorder %v885_v2, %v832_v13  ;;  %s929_s0 = sshll.u32 %s106_s7, 4  ;;  %s2415_s5 = scalar_lea.hbm %s2681_s12, %s1014_s14  ;;  %s2410_s0 = int_to_ptr.vmem [resolvable:$true] %s929_s0 }
 0x106   : > { %vm887_vm0 = vmand %vm878_vm5, %vm886_vm6  ;;  %s1079_s15 = scalar_lea.vmem %s2410_s0, 640  ;;  %p1086_p2 = scmp.lt.s32.totalorder %s2410_s0, %s1084_s2 }
 0x107   : > { %v888_v6 = vsel %vm887_vm0, %v885_v2, %v832_v13  ;;  %v890_v7 = vsel %vm887_vm0, %v889_v5, %v834_v14  ;;  %p1080_p13 = scmp.ne.s32.totalorder %s2410_s0, %s1079_s15  ;;  %p1087_p3 = scmp.lt.s32.totalorder %s1085_s25, %s1079_s15 }
 0x108   : > { %vm891_vm1 = vcmp.lt.f32.partialorder %v888_v6, 1e+30  ;;  %v892_v3 = vmul.f32 1.5258789e-05, %v890_v7 }
 0x109   : > { %v1003_v9 = vsel %vm891_vm1, 1.0, %v1146_v8  ;;  %v912_v10 = vsel %vm891_vm1, %v888_v6, -1.0  ;;  %p1081_p0 = pnand %p1080_p13, %p1198_p5  ;;  %p1088_p4 = por %p1087_p3, %p1086_p2 }
 0x10a   : > { %v893_v11 = vfloor.f32 %v892_v3  ;;  %1004 = vst [vmem:[%s106_s7 + $0x18] sm:$0xff] %v1003_v9  ;;  %1005 = vst [vmem:[%s106_s7 + $0x20] sm:$0xff] %v912_v10 }
 0x10b   : > { %p1082_p1 = pneg %p1081_p0 }
 0x10c   : > { %v894_v12 = vmul.f32 65536.0, %v893_v11  ;;  %v900_v4 = vmul.f32 0.003921569, %v893_v11 }
 0x10d   : > { %p1089_p7 = pnand %p1088_p4, %p1082_p1 }
 0x10e   : > { %v895_v15 = vsub.f32 %v890_v7, %v894_v12  ;;  %901 = vst [vmem:[%s106_s7] sm:$0xff] %v900_v4 }
 0x110   : > { %v896_v16 = vmul.f32 0.00390625, %v895_v15 }
 0x112   : > { %v897_v17 = vfloor.f32 %v896_v16 }
 0x114   : > { %v898_v18 = vmul.f32 256.0, %v897_v17  ;;  %v902_v19 = vmul.f32 0.003921569, %v897_v17 }
 0x116   : > { %v899_v20 = vsub.f32 %v895_v15, %v898_v18  ;;  %1001 = vst [vmem:[%s106_s7 + $0x8] sm:$0xff] %v902_v19 }
 0x118   : > { %v905_v30 = vmul.f32 0.003921569, %v899_v20 }
 0x11a   : > { %1002 = vst [vmem:[%s106_s7 + $0x10] sm:$0xff] %v905_v30 }
 0x11b   : > { %1092 = shalt.err (!%p1089_p7)
}
 0x11c   : > { %s1093_s23 = scalar_lea.hbm %s2415_s5, 640  ;;  %s1097_s28 = scalar_lea.hbm %s2681_s12, 1280 }
 0x11d   : > { %p1094_p8 = scmp.ne.s32.totalorder %s2415_s5, %s1093_s23  ;;  %p1098_p11 = scmp.lt.s32.totalorder %s2415_s5, %s2681_s12 }
 0x11e   : > { %p1099_p12 = scmp.lt.s32.totalorder %s1097_s28, %s1093_s23 }
 0x11f   : > { %p1095_p9 = pnand %p1094_p8, %p1198_p5 }
 0x120   : > { %p1100_p13 = por %p1099_p12, %p1098_p11 }
 0x121   : > { %p1096_p10 = pneg %p1095_p9 }
 0x123   : > { %p1101_p0 = pnand %p1100_p13, %p1096_p10 }
 0x125   : > { %1104 = shalt.err (!%p1101_p0)
}
 0x126   : > { %s1148_s11 = smov 128   ;;  %s1149_s10 = smov 8  }
 0x127   : > { %1019 = dma.vmem_to_hbm [thread:$0]  (%p1198_p5), %s2410_s0, 640, %s2415_s5, %s2419_s21, %s1148_s11, %s1148_s11, %s1149_s10  }
 0x128 PF: > { %s2682_s6 = sld [smem:[#allocation11_spill]] }
 0x129   : > { %s2683_s29 = sld [smem:[#allocation8_spill]] }
 0x12e   : > { %p1031_p1 = scmp.ge.s32.totalorder %s2682_s6, 2 }
 0x12f   : > { %s944_s30 = sand.u32 1, %s2683_s29  }
 0x130   : > { %p1026_p2 = pnand %p1031_p1, %p1202_p6  ;;  %s945_s19 = scalar_lea.sflag [#allocation3], %s944_s30 }
 0x132   : > { %p1027_p3 = pneg %p1026_p2 }
 0x134   : > { %1126 = dma.done.wait (%p1027_p3), %s945_s19, 640  }
 0x135   : > { %1128 = vsyncadd (%p1027_p3), %s945_s19, 4294966656  ;;  %s2685_s9 = sld [smem:[#allocation13_spill]] }
 0x136   : > { %s2686_s6 = sld [smem:[#allocation9_spill]] }
 0x137   : > { %s2687_s7 = sld [smem:[#allocation10_spill]] }
 0x138   : > { %s2688_s8 = sld [smem:[#allocation14_spill]] }
 0x13b   : > { %p12_p4 = scmp.ge.s32.totalorder %s2685_s9, 4  }
 0x13d   :  { %14 = sbr.rel (!%p12_p4) target bundleno = 7 (0x7), region = 65 }
 0x142   :  { %950 = vsyncpa [#allocation3], 1 }
 0x143   :  { %952 = vsyncpa [#allocation3 + $0x1], 1 }
 0x144   :  { %953 = vsyncpa [#allocation4], 1 }
 0x145   :  { %955 = vsyncpa [#allocation4 + $0x1], 1 }

</bundles_post_ra>
